<compile_context>
chip_gen: v5e
topology: v5e:2x2
jax: 0.10.0
libtpu: 0.0.40
codegen_flags: <defaults>
</compile_context>

<pallas_src>
import functools

import jax
import jax.numpy as jnp
from jax.experimental import pallas as pl
from jax.experimental.pallas import tpu as pltpu


def _silu(z):
    return z * jax.nn.sigmoid(z)


def _c3_kernel(c_, H, W,
               x_ref, masks_ref,
               w12_ref, t12_ref,
               wb1_ref, tb1_ref,
               wb2_ref, tb2_ref,
               w3_ref, t3_ref,
               o_ref):
    """One batch-group per grid step.

    x_ref: (C1, N) with N = images_per_step * H * W (images packed on lanes).
    o_ref: (C2, N).
    """
    x = x_ref[...]
    dt = x.dtype
    N = x.shape[1]

    # cv1 + cv2 fused: one (2c_, C1) x (C1, N) MXU matmul (BN scale folded into
    # the weights, only the bias add left), then SiLU; slice y1 / y2.
    y12 = _silu(jnp.dot(w12_ref[...], x, preferred_element_type=jnp.float32)
                + t12_ref[...])                       # (2c_, N) f32
    y12_c = y12.astype(dt)
    y1 = y12[:c_]                                     # f32, for shortcut add
    y1_c = y12_c[:c_]
    y2_c = y12_c[c_:]

    # bottleneck.cv1: 1x1 conv + bias + SiLU.
    h = _silu(jnp.dot(wb1_ref[...], y1_c, preferred_element_type=jnp.float32)
              + tb1_ref[...])                         # (c_, N) f32
    h_c = h.astype(dt)

    # bottleneck.cv2: 3x3 conv (stride 1, pad 1). Each tap is a circular roll
    # (XLU) of the packed lane axis, zeroed by a precomputed boundary mask
    # (reproduces the zero-padded spatial shift, also across image boundaries).
    # All 9 taps are stacked along the sublane axis and contracted with ONE
    # (c_, 9c_) x (9c_, N) matmul.
    taps = []
    for k in range(9):
        dy, dx = k // 3 - 1, k % 3 - 1
        if dy == 0 and dx == 0:
            taps.append(h_c)
        else:
            shift = (-(dy * W + dx)) % N
            taps.append(pltpu.roll(h_c, shift=shift, axis=1) * masks_ref[k])
    t_mat = jnp.concatenate(taps, axis=0)             # (9c_, N) dt
    u = _silu(jnp.dot(wb2_ref[...], t_mat, preferred_element_type=jnp.float32)
              + tb2_ref[...])                         # (c_, N) f32

    m = y1 + u                                        # bottleneck shortcut add

    # cv3 over concat([m, y2], channel): single (C2, 2c_) x (2c_, N) matmul on
    # the small sublane concat.
    cat = jnp.concatenate([m.astype(dt), y2_c], axis=0)   # (2c_, N) dt
    z = jnp.dot(w3_ref[...], cat, preferred_element_type=jnp.float32) + t3_ref[...]
    o_ref[...] = _silu(z).astype(o_ref.dtype)


def fold_bn(gamma, beta, mean, var, eps=1e-5):
    scale = gamma / jnp.sqrt(var + eps)
    shift = beta - mean * scale
    return scale.astype(jnp.float32), shift.astype(jnp.float32)


def c3_forward(x, p, lane_target=4096):
    """x: (B, C1, H, W) NCHW.  p: dict of conv weights + folded BN scale/shift."""
    B, C1, H, W = x.shape
    HW = H * W
    c_ = p["w1"].shape[0]
    C2 = p["w3"].shape[0]
    dt = x.dtype

    # Pack images along the lane axis: (C1, B*HW).
    x2 = jnp.transpose(x, (1, 0, 2, 3)).reshape(C1, B * HW)

    # Images per grid step: largest divisor of B keeping the lane width near
    # `lane_target` (amortizes ~0.35us/step overhead, keeps stores lane-dense).
    bt = 1
    for d in range(1, B + 1):
        if B % d == 0 and d * HW <= max(lane_target, HW):
            bt = d
    n = bt * HW
    grid = (B // bt,)

    # Boundary masks for the 9 taps of the zero-padded 3x3 conv, tiled over the
    # images in one grid step: (9, 1, n).
    ys = jnp.arange(H)[:, None]
    xs = jnp.arange(W)[None, :]
    masks1 = jnp.stack(
        [((ys + (k // 3 - 1) >= 0) & (ys + (k // 3 - 1) < H) &
          (xs + (k % 3 - 1) >= 0) & (xs + (k % 3 - 1) < W)).reshape(1, HW)
         for k in range(9)], axis=0).astype(dt)                  # (9, 1, HW)
    masks = jnp.tile(masks1, (1, 1, bt))                         # (9, 1, n)

    col = lambda v: v.reshape(-1, 1).astype(jnp.float32)

    # Fold BN scale into the conv weights (host-side); cast weights to x.dtype.
    w12 = jnp.concatenate([p["w1"] * p["s1"][:, None],
                           p["w2"] * p["s2"][:, None]], axis=0).astype(dt)
    t12 = col(jnp.concatenate([p["t1"], p["t2"]]))
    wb1 = (p["wb1"] * p["sb1"][:, None]).astype(dt)
    wb2 = p["wb2"] * p["sb2"][:, None, None, None]
    # Stacked 3x3 weights: block k (= ky*3+kx) multiplies tap (dy,dx)=(ky-1,kx-1).
    wb2s = jnp.transpose(wb2, (0, 2, 3, 1)).reshape(c_, 9 * c_).astype(dt)
    w3 = (p["w3"] * p["s3"][:, None]).astype(dt)

    operands = [
        x2, masks,
        w12, t12,
        wb1, col(p["tb1"]),
        wb2s, col(p["tb2"]),
        w3, col(p["t3"]),
    ]

    def const_spec(a):
        return pl.BlockSpec(a.shape, lambda i, _nd=a.ndim: (0,) * _nd)

    in_specs = [pl.BlockSpec((C1, n), lambda i: (0, i))]
    in_specs += [const_spec(a) for a in operands[1:]]

    out = pl.pallas_call(
        functools.partial(_c3_kernel, c_, H, W),
        out_shape=jax.ShapeDtypeStruct((C2, B * HW), dt),
        grid_spec=pl.GridSpec(
            grid=grid,
            in_specs=in_specs,
            out_specs=pl.BlockSpec((C2, n), lambda i: (0, i)),
        ),
        compiler_params=pltpu.CompilerParams(
            dimension_semantics=("parallel",),
            vmem_limit_bytes=32 * 1024 * 1024,   # safe on v5e/v6e/v7x
        ),
    )(*operands)
    return jnp.transpose(out.reshape(C2, B, H, W), (1, 0, 2, 3))


def c3_ref(x, p):
    """Pure-JAX reference mirroring the PyTorch C3 forward (eval-mode BN)."""
    hp = jax.lax.Precision.HIGHEST

    def conv1x1(v, w):
        return jnp.einsum("bchw,oc->bohw", v, w, precision=hp)

    def conv3x3(v, w):
        return jax.lax.conv_general_dilated(
            v, w, window_strides=(1, 1), padding=((1, 1), (1, 1)),
            dimension_numbers=("NCHW", "OIHW", "NCHW"), precision=hp)

    def bn(v, s, t):
        return v * s[None, :, None, None] + t[None, :, None, None]

    silu = lambda z: z * jax.nn.sigmoid(z)

    y1 = silu(bn(conv1x1(x, p["w1"]), p["s1"], p["t1"]))          # cv1
    y2 = silu(bn(conv1x1(x, p["w2"]), p["s2"], p["t2"]))          # cv2
    h = silu(bn(conv1x1(y1, p["wb1"]), p["sb1"], p["tb1"]))       # m[0].cv1
    u = silu(bn(conv3x3(h, p["wb2"]), p["sb2"], p["tb2"]))        # m[0].cv2
    m = y1 + u                                                    # shortcut
    cat = jnp.concatenate([m, y2], axis=1)
    return silu(bn(conv1x1(cat, p["w3"]), p["s3"], p["t3"]))      # cv3


if __name__ == "__main__":
    key = jax.random.PRNGKey(0)
    B, C1, C2, H, W = 2, 32, 32, 16, 16      # small C3: c1 = c2 = 32 -> c_ = 16
    c_ = C2 // 2

    kit = iter(jax.random.split(key, 32))

    def rnd(shape, scale=0.1):
        return scale * jax.random.normal(next(kit), shape, dtype=jnp.float32)

    def bn_params(c):
        gamma = 1.0 + 0.1 * jax.random.normal(next(kit), (c,), dtype=jnp.float32)
        beta = 0.1 * jax.random.normal(next(kit), (c,), dtype=jnp.float32)
        mean = 0.1 * jax.random.normal(next(kit), (c,), dtype=jnp.float32)
        var = 0.5 + jnp.abs(jax.random.normal(next(kit), (c,), dtype=jnp.float32))
        return fold_bn(gamma, beta, mean, var)

    x = jax.random.normal(next(kit), (B, C1, H, W), dtype=jnp.float32)

    p = {}
    p["w1"] = rnd((c_, C1)); p["s1"], p["t1"] = bn_params(c_)        # cv1
    p["w2"] = rnd((c_, C1)); p["s2"], p["t2"] = bn_params(c_)        # cv2
    p["wb1"] = rnd((c_, c_)); p["sb1"], p["tb1"] = bn_params(c_)     # m[0].cv1
    p["wb2"] = rnd((c_, c_, 3, 3)); p["sb2"], p["tb2"] = bn_params(c_)  # m[0].cv2
    p["w3"] = rnd((C2, 2 * c_)); p["s3"], p["t3"] = bn_params(C2)    # cv3

    out = jax.block_until_ready(c3_forward(x, p))
    ref = c3_ref(x, p)

    assert out.shape == (B, C2, H, W)
    assert jnp.allclose(out, ref, atol=1e-3, rtol=1e-3), (
        float(jnp.max(jnp.abs(out - ref))))
    print("KERNEL_OK")
</pallas_src>

<mosaic_0001>
module attributes {stable_mosaic.version = 11 : i64} {
  func.func @_c3_kernel(%arg0: i32, %arg1: memref<32x512xf32, #tpu.memory_space<vmem>>, %arg2: memref<9x1x512xf32, #tpu.memory_space<vmem>>, %arg3: memref<32x32xf32, #tpu.memory_space<vmem>>, %arg4: memref<32x1xf32, #tpu.memory_space<vmem>>, %arg5: memref<16x16xf32, #tpu.memory_space<vmem>>, %arg6: memref<16x1xf32, #tpu.memory_space<vmem>>, %arg7: memref<16x144xf32, #tpu.memory_space<vmem>>, %arg8: memref<16x1xf32, #tpu.memory_space<vmem>>, %arg9: memref<32x32xf32, #tpu.memory_space<vmem>>, %arg10: memref<32x1xf32, #tpu.memory_space<vmem>>, %arg11: memref<32x512xf32, #tpu.memory_space<vmem>>) attributes {dimension_semantics = [#tpu.dimension_semantics<parallel>], iteration_bounds = array<i64: 1>, scalar_prefetch = 0 : i64, scratch_operands = 0 : i64, tpu.core_type = #tpu.core_type<tc>, window_params = [{transform_indices = @transform_0, window_bounds = array<i64: 32, 512>}, {pipeline_mode = #tpu.pipeline_mode<synchronous>, transform_indices = @transform_1, window_bounds = array<i64: 9, 1, 512>}, {pipeline_mode = #tpu.pipeline_mode<synchronous>, transform_indices = @transform_2, window_bounds = array<i64: 32, 32>}, {pipeline_mode = #tpu.pipeline_mode<synchronous>, transform_indices = @transform_3, window_bounds = array<i64: 32, 1>}, {pipeline_mode = #tpu.pipeline_mode<synchronous>, transform_indices = @transform_4, window_bounds = array<i64: 16, 16>}, {pipeline_mode = #tpu.pipeline_mode<synchronous>, transform_indices = @transform_5, window_bounds = array<i64: 16, 1>}, {pipeline_mode = #tpu.pipeline_mode<synchronous>, transform_indices = @transform_6, window_bounds = array<i64: 16, 144>}, {pipeline_mode = #tpu.pipeline_mode<synchronous>, transform_indices = @transform_7, window_bounds = array<i64: 16, 1>}, {pipeline_mode = #tpu.pipeline_mode<synchronous>, transform_indices = @transform_8, window_bounds = array<i64: 32, 32>}, {pipeline_mode = #tpu.pipeline_mode<synchronous>, transform_indices = @transform_9, window_bounds = array<i64: 32, 1>}, {transform_indices = @transform_10, window_bounds = array<i64: 32, 512>}]} {
    %c0 = arith.constant 0 : index
    %c0_0 = arith.constant 0 : index
    %0 = vector.load %arg1[%c0, %c0_0] : memref<32x512xf32, #tpu.memory_space<vmem>>, vector<32x512xf32>
    %c0_1 = arith.constant 0 : index
    %c0_2 = arith.constant 0 : index
    %1 = vector.load %arg3[%c0_1, %c0_2] : memref<32x32xf32, #tpu.memory_space<vmem>>, vector<32x32xf32>
    %cst = arith.constant dense<0.000000e+00> : vector<32x512xf32>
    %2 = tpu.matmul %1, %0, %cst {dimension_numbers = #tpu.dot_dimension_numbers<[1], [0], [0], [1], [0, 0, 1, 1], [], []>} : vector<32x32xf32>, vector<32x512xf32>, vector<32x512xf32> -> vector<32x512xf32>
    %c0_3 = arith.constant 0 : index
    %c0_4 = arith.constant 0 : index
    %3 = vector.load %arg4[%c0_3, %c0_4] : memref<32x1xf32, #tpu.memory_space<vmem>>, vector<32x1xf32>
    %4 = vector.broadcast %3 : vector<32x1xf32> to vector<32x512xf32>
    %5 = arith.addf %2, %4 : vector<32x512xf32>
    %6 = arith.negf %5 : vector<32x512xf32>
    %7 = math.exp %6 : vector<32x512xf32>
    %cst_5 = arith.constant 1.000000e+00 : f32
    %8 = vector.broadcast %cst_5 : f32 to vector<32x512xf32>
    %9 = arith.addf %8, %7 : vector<32x512xf32>
    %10 = arith.divf %8, %9 : vector<32x512xf32>
    %11 = arith.mulf %5, %10 : vector<32x512xf32>
    %12 = vector.extract_strided_slice %11 {offsets = [0, 0], sizes = [16, 512], strides = [1, 1]} : vector<32x512xf32> to vector<16x512xf32>
    %13 = vector.extract_strided_slice %11 {offsets = [0, 0], sizes = [16, 512], strides = [1, 1]} : vector<32x512xf32> to vector<16x512xf32>
    %14 = vector.extract_strided_slice %11 {offsets = [16, 0], sizes = [16, 512], strides = [1, 1]} : vector<32x512xf32> to vector<16x512xf32>
    %c0_6 = arith.constant 0 : index
    %c0_7 = arith.constant 0 : index
    %15 = vector.load %arg5[%c0_6, %c0_7] : memref<16x16xf32, #tpu.memory_space<vmem>>, vector<16x16xf32>
    %cst_8 = arith.constant dense<0.000000e+00> : vector<16x512xf32>
    %16 = tpu.matmul %15, %13, %cst_8 {dimension_numbers = #tpu.dot_dimension_numbers<[1], [0], [0], [1], [0, 0, 1, 1], [], []>} : vector<16x16xf32>, vector<16x512xf32>, vector<16x512xf32> -> vector<16x512xf32>
    %c0_9 = arith.constant 0 : index
    %c0_10 = arith.constant 0 : index
    %17 = vector.load %arg6[%c0_9, %c0_10] : memref<16x1xf32, #tpu.memory_space<vmem>>, vector<16x1xf32>
    %18 = vector.broadcast %17 : vector<16x1xf32> to vector<16x512xf32>
    %19 = arith.addf %16, %18 : vector<16x512xf32>
    %20 = arith.negf %19 : vector<16x512xf32>
    %21 = math.exp %20 : vector<16x512xf32>
    %cst_11 = arith.constant 1.000000e+00 : f32
    %22 = vector.broadcast %cst_11 : f32 to vector<16x512xf32>
    %23 = arith.addf %22, %21 : vector<16x512xf32>
    %24 = arith.divf %22, %23 : vector<16x512xf32>
    %25 = arith.mulf %19, %24 : vector<16x512xf32>
    %c17_i32 = arith.constant 17 : i32
    %26 = tpu.dynamic_rotate %25 by %c17_i32 dim 1 : vector<16x512xf32>, i32 -> vector<16x512xf32>
    %c0_12 = arith.constant 0 : index
    %c0_13 = arith.constant 0 : index
    %c0_14 = arith.constant 0 : index
    %27 = vector.load %arg2[%c0_12, %c0_13, %c0_14] : memref<9x1x512xf32, #tpu.memory_space<vmem>>, vector<1x1x512xf32>
    %28 = vector.shape_cast %27 : vector<1x1x512xf32> to vector<1x512xf32>
    %29 = vector.broadcast %28 : vector<1x512xf32> to vector<16x512xf32>
    %30 = arith.mulf %26, %29 : vector<16x512xf32>
    %c16_i32 = arith.constant 16 : i32
    %31 = tpu.dynamic_rotate %25 by %c16_i32 dim 1 : vector<16x512xf32>, i32 -> vector<16x512xf32>
    %c1 = arith.constant 1 : index
    %c0_15 = arith.constant 0 : index
    %c0_16 = arith.constant 0 : index
    %32 = vector.load %arg2[%c1, %c0_15, %c0_16] : memref<9x1x512xf32, #tpu.memory_space<vmem>>, vector<1x1x512xf32>
    %33 = vector.shape_cast %32 : vector<1x1x512xf32> to vector<1x512xf32>
    %34 = vector.broadcast %33 : vector<1x512xf32> to vector<16x512xf32>
    %35 = arith.mulf %31, %34 : vector<16x512xf32>
    %c15_i32 = arith.constant 15 : i32
    %36 = tpu.dynamic_rotate %25 by %c15_i32 dim 1 : vector<16x512xf32>, i32 -> vector<16x512xf32>
    %c2 = arith.constant 2 : index
    %c0_17 = arith.constant 0 : index
    %c0_18 = arith.constant 0 : index
    %37 = vector.load %arg2[%c2, %c0_17, %c0_18] : memref<9x1x512xf32, #tpu.memory_space<vmem>>, vector<1x1x512xf32>
    %38 = vector.shape_cast %37 : vector<1x1x512xf32> to vector<1x512xf32>
    %39 = vector.broadcast %38 : vector<1x512xf32> to vector<16x512xf32>
    %40 = arith.mulf %36, %39 : vector<16x512xf32>
    %c1_i32 = arith.constant 1 : i32
    %41 = tpu.dynamic_rotate %25 by %c1_i32 dim 1 : vector<16x512xf32>, i32 -> vector<16x512xf32>
    %c3 = arith.constant 3 : index
    %c0_19 = arith.constant 0 : index
    %c0_20 = arith.constant 0 : index
    %42 = vector.load %arg2[%c3, %c0_19, %c0_20] : memref<9x1x512xf32, #tpu.memory_space<vmem>>, vector<1x1x512xf32>
    %43 = vector.shape_cast %42 : vector<1x1x512xf32> to vector<1x512xf32>
    %44 = vector.broadcast %43 : vector<1x512xf32> to vector<16x512xf32>
    %45 = arith.mulf %41, %44 : vector<16x512xf32>
    %c511_i32 = arith.constant 511 : i32
    %46 = tpu.dynamic_rotate %25 by %c511_i32 dim 1 : vector<16x512xf32>, i32 -> vector<16x512xf32>
    %c5 = arith.constant 5 : index
    %c0_21 = arith.constant 0 : index
    %c0_22 = arith.constant 0 : index
    %47 = vector.load %arg2[%c5, %c0_21, %c0_22] : memref<9x1x512xf32, #tpu.memory_space<vmem>>, vector<1x1x512xf32>
    %48 = vector.shape_cast %47 : vector<1x1x512xf32> to vector<1x512xf32>
    %49 = vector.broadcast %48 : vector<1x512xf32> to vector<16x512xf32>
    %50 = arith.mulf %46, %49 : vector<16x512xf32>
    %c497_i32 = arith.constant 497 : i32
    %51 = tpu.dynamic_rotate %25 by %c497_i32 dim 1 : vector<16x512xf32>, i32 -> vector<16x512xf32>
    %c6 = arith.constant 6 : index
    %c0_23 = arith.constant 0 : index
    %c0_24 = arith.constant 0 : index
    %52 = vector.load %arg2[%c6, %c0_23, %c0_24] : memref<9x1x512xf32, #tpu.memory_space<vmem>>, vector<1x1x512xf32>
    %53 = vector.shape_cast %52 : vector<1x1x512xf32> to vector<1x512xf32>
    %54 = vector.broadcast %53 : vector<1x512xf32> to vector<16x512xf32>
    %55 = arith.mulf %51, %54 : vector<16x512xf32>
    %c496_i32 = arith.constant 496 : i32
    %56 = tpu.dynamic_rotate %25 by %c496_i32 dim 1 : vector<16x512xf32>, i32 -> vector<16x512xf32>
    %c7 = arith.constant 7 : index
    %c0_25 = arith.constant 0 : index
    %c0_26 = arith.constant 0 : index
    %57 = vector.load %arg2[%c7, %c0_25, %c0_26] : memref<9x1x512xf32, #tpu.memory_space<vmem>>, vector<1x1x512xf32>
    %58 = vector.shape_cast %57 : vector<1x1x512xf32> to vector<1x512xf32>
    %59 = vector.broadcast %58 : vector<1x512xf32> to vector<16x512xf32>
    %60 = arith.mulf %56, %59 : vector<16x512xf32>
    %c495_i32 = arith.constant 495 : i32
    %61 = tpu.dynamic_rotate %25 by %c495_i32 dim 1 : vector<16x512xf32>, i32 -> vector<16x512xf32>
    %c8 = arith.constant 8 : index
    %c0_27 = arith.constant 0 : index
    %c0_28 = arith.constant 0 : index
    %62 = vector.load %arg2[%c8, %c0_27, %c0_28] : memref<9x1x512xf32, #tpu.memory_space<vmem>>, vector<1x1x512xf32>
    %63 = vector.shape_cast %62 : vector<1x1x512xf32> to vector<1x512xf32>
    %64 = vector.broadcast %63 : vector<1x512xf32> to vector<16x512xf32>
    %65 = arith.mulf %61, %64 : vector<16x512xf32>
    %66 = tpu.concatenate %30, %35, %40, %45, %25, %50, %55, %60, %65 in 0 : vector<16x512xf32>, vector<16x512xf32>, vector<16x512xf32>, vector<16x512xf32>, vector<16x512xf32>, vector<16x512xf32>, vector<16x512xf32>, vector<16x512xf32>, vector<16x512xf32> -> vector<144x512xf32>
    %c0_29 = arith.constant 0 : index
    %c0_30 = arith.constant 0 : index
    %67 = vector.load %arg7[%c0_29, %c0_30] : memref<16x144xf32, #tpu.memory_space<vmem>>, vector<16x144xf32>
    %cst_31 = arith.constant dense<0.000000e+00> : vector<16x512xf32>
    %68 = tpu.matmul %67, %66, %cst_31 {dimension_numbers = #tpu.dot_dimension_numbers<[1], [0], [0], [1], [0, 0, 1, 1], [], []>} : vector<16x144xf32>, vector<144x512xf32>, vector<16x512xf32> -> vector<16x512xf32>
    %c0_32 = arith.constant 0 : index
    %c0_33 = arith.constant 0 : index
    %69 = vector.load %arg8[%c0_32, %c0_33] : memref<16x1xf32, #tpu.memory_space<vmem>>, vector<16x1xf32>
    %70 = vector.broadcast %69 : vector<16x1xf32> to vector<16x512xf32>
    %71 = arith.addf %68, %70 : vector<16x512xf32>
    %72 = arith.negf %71 : vector<16x512xf32>
    %73 = math.exp %72 : vector<16x512xf32>
    %cst_34 = arith.constant 1.000000e+00 : f32
    %74 = vector.broadcast %cst_34 : f32 to vector<16x512xf32>
    %75 = arith.addf %74, %73 : vector<16x512xf32>
    %76 = arith.divf %74, %75 : vector<16x512xf32>
    %77 = arith.mulf %71, %76 : vector<16x512xf32>
    %78 = arith.addf %12, %77 : vector<16x512xf32>
    %79 = tpu.concatenate %78, %14 in 0 : vector<16x512xf32>, vector<16x512xf32> -> vector<32x512xf32>
    %c0_35 = arith.constant 0 : index
    %c0_36 = arith.constant 0 : index
    %80 = vector.load %arg9[%c0_35, %c0_36] : memref<32x32xf32, #tpu.memory_space<vmem>>, vector<32x32xf32>
    %cst_37 = arith.constant dense<0.000000e+00> : vector<32x512xf32>
    %81 = tpu.matmul %80, %79, %cst_37 {dimension_numbers = #tpu.dot_dimension_numbers<[1], [0], [0], [1], [0, 0, 1, 1], [], []>} : vector<32x32xf32>, vector<32x512xf32>, vector<32x512xf32> -> vector<32x512xf32>
    %c0_38 = arith.constant 0 : index
    %c0_39 = arith.constant 0 : index
    %82 = vector.load %arg10[%c0_38, %c0_39] : memref<32x1xf32, #tpu.memory_space<vmem>>, vector<32x1xf32>
    %83 = vector.broadcast %82 : vector<32x1xf32> to vector<32x512xf32>
    %84 = arith.addf %81, %83 : vector<32x512xf32>
    %85 = arith.negf %84 : vector<32x512xf32>
    %86 = math.exp %85 : vector<32x512xf32>
    %cst_40 = arith.constant 1.000000e+00 : f32
    %87 = vector.broadcast %cst_40 : f32 to vector<32x512xf32>
    %88 = arith.addf %87, %86 : vector<32x512xf32>
    %89 = arith.divf %87, %88 : vector<32x512xf32>
    %90 = arith.mulf %84, %89 : vector<32x512xf32>
    %c0_41 = arith.constant 0 : index
    %c0_42 = arith.constant 0 : index
    %91 = vector.load %arg11[%c0_41, %c0_42] : memref<32x512xf32, #tpu.memory_space<vmem>>, vector<32x512xf32>
    tpu.vector_store %arg11[%c0_41, %c0_42], %90 {strides = array<i32>} : memref<32x512xf32, #tpu.memory_space<vmem>>, vector<32x512xf32>,
    return
  }
  func.func @transform_0(%arg0: i32) -> (i32, i32) {
    %c0_i32 = arith.constant 0 : i32
    %c0_i32_0 = arith.constant 0 : i32
    return %c0_i32, %arg0 : i32, i32
  }
  func.func @transform_1(%arg0: i32) -> (i32, i32, i32) {
    %c0_i32 = arith.constant 0 : i32
    %c0_i32_0 = arith.constant 0 : i32
    %c0_i32_1 = arith.constant 0 : i32
    %c0_i32_2 = arith.constant 0 : i32
    return %c0_i32, %c0_i32_0, %c0_i32_1 : i32, i32, i32
  }
  func.func @transform_2(%arg0: i32) -> (i32, i32) {
    %c0_i32 = arith.constant 0 : i32
    %c0_i32_0 = arith.constant 0 : i32
    %c0_i32_1 = arith.constant 0 : i32
    return %c0_i32, %c0_i32_0 : i32, i32
  }
  func.func @transform_3(%arg0: i32) -> (i32, i32) {
    %c0_i32 = arith.constant 0 : i32
    %c0_i32_0 = arith.constant 0 : i32
    %c0_i32_1 = arith.constant 0 : i32
    return %c0_i32, %c0_i32_0 : i32, i32
  }
  func.func @transform_4(%arg0: i32) -> (i32, i32) {
    %c0_i32 = arith.constant 0 : i32
    %c0_i32_0 = arith.constant 0 : i32
    %c0_i32_1 = arith.constant 0 : i32
    return %c0_i32, %c0_i32_0 : i32, i32
  }
  func.func @transform_5(%arg0: i32) -> (i32, i32) {
    %c0_i32 = arith.constant 0 : i32
    %c0_i32_0 = arith.constant 0 : i32
    %c0_i32_1 = arith.constant 0 : i32
    return %c0_i32, %c0_i32_0 : i32, i32
  }
  func.func @transform_6(%arg0: i32) -> (i32, i32) {
    %c0_i32 = arith.constant 0 : i32
    %c0_i32_0 = arith.constant 0 : i32
    %c0_i32_1 = arith.constant 0 : i32
    return %c0_i32, %c0_i32_0 : i32, i32
  }
  func.func @transform_7(%arg0: i32) -> (i32, i32) {
    %c0_i32 = arith.constant 0 : i32
    %c0_i32_0 = arith.constant 0 : i32
    %c0_i32_1 = arith.constant 0 : i32
    return %c0_i32, %c0_i32_0 : i32, i32
  }
  func.func @transform_8(%arg0: i32) -> (i32, i32) {
    %c0_i32 = arith.constant 0 : i32
    %c0_i32_0 = arith.constant 0 : i32
    %c0_i32_1 = arith.constant 0 : i32
    return %c0_i32, %c0_i32_0 : i32, i32
  }
  func.func @transform_9(%arg0: i32) -> (i32, i32) {
    %c0_i32 = arith.constant 0 : i32
    %c0_i32_0 = arith.constant 0 : i32
    %c0_i32_1 = arith.constant 0 : i32
    return %c0_i32, %c0_i32_0 : i32, i32
  }
  func.func @transform_10(%arg0: i32) -> (i32, i32) {
    %c0_i32 = arith.constant 0 : i32
    %c0_i32_0 = arith.constant 0 : i32
    return %c0_i32, %arg0 : i32, i32
  }
}

</mosaic_0001>

<bundles_post_ra>
// kernel: tpu_custom_call.1
= control target key start
LH: loop header
LB: loop body
LE: loop exit
PB: predicated region body
PF: predicated region fallthrough
CT: control target
= control target key end

     0   :  { %15 = vsyncpa [#allocation3], 0  ;;  %s4063_s0 = inlined_call_operand.hbm [shape: f32[32,512], index: 0, kind: input, shape index: {}]   ;;  %s4064_s1 = inlined_call_operand.vmem [shape: f32[9,1,512], index: 1, kind: input, shape index: {}]   ;;  %s4065_s2 = inlined_call_operand.vmem [shape: f32[32,32], index: 2, kind: input, shape index: {}]   ;;  %s4066_s3 = inlined_call_operand.vmem [shape: f32[32,1], index: 3, kind: input, shape index: {}]   ;;  %s4067_s4 = inlined_call_operand.vmem [shape: f32[16,16], index: 4, kind: input, shape index: {}]   ;;  %s4068_s5 = inlined_call_operand.vmem [shape: f32[16,1], index: 5, kind: input, shape index: {}]   ;;  %s4069_s6 = inlined_call_operand.hbm [shape: f32[16,144], index: 6, kind: input, shape index: {}]   ;;  %s4070_s7 = inlined_call_operand.vmem [shape: f32[16,1], index: 7, kind: input, shape index: {}]   ;;  %s4071_s8 = inlined_call_operand.hbm [shape: f32[32,32], index: 8, kind: input, shape index: {}]   ;;  %s4072_s9 = inlined_call_operand.vmem [shape: f32[32,1], index: 9, kind: input, shape index: {}]   ;;  %s4073_s10 = inlined_call_operand.hbm [shape: f32[32,512], index: 10, kind: output, shape index: {}]  }
   0x1   :  { %16 = vsyncpa [#allocation6], 0  ;;  %s45_s15 = sshll.u32 %s4069_s6, 4  ;;  %s46_s15 = int_to_ptr.hbm [resolvable:$true] %s45_s15 }
   0x2   :  { %17 = vsyncpa [#allocation4], 0  ;;  %s2510_s16 = smov [#allocation5]   ;;  %s22_s20 = sshll.u32 %s4063_s0, 4  ;;  %s23_s20 = int_to_ptr.hbm [resolvable:$true] %s22_s20 }
   0x3   :  { %s47_s17 = sshll.u32 %s2510_s16, 4  ;;  %s2511_s21 = smov 256   ;;  %s48_s17 = int_to_ptr.vmem [resolvable:$true] %s47_s17 }
   0x4   :  { %s2512_s22 = smov 16   ;;  %s2513_s23 = smov [#allocation2]  }
   0x5   :  { %53 = dma.hbm_to_vmem [thread:$0]  %s46_s15, 512, %s48_s17, [#allocation6], %s2511_s21, %s2511_s21, %s2512_s22  }
   0x6   :  { %s24_s24 = sshll.u32 %s2513_s23, 4  ;;  %s2514_s25 = smov 512   ;;  %s25_s24 = int_to_ptr.vmem [resolvable:$true] %s24_s24 }
   0x7   :  { %s2515_s26 = smov 32   ;;  %s60_s28 = sshll.u32 %s4071_s8, 4  ;;  %s61_s28 = int_to_ptr.hbm [resolvable:$true] %s60_s28 }
   0x8   :  { %30 = dma.hbm_to_vmem [thread:$0]  %s23_s20, 2048, %s25_s24, [#allocation3], %s2514_s25, %s2514_s25, %s2515_s26  }
   0x9   :  { %s2516_s0 = smov [#allocation7]   ;;  %s2517_s30 = smov 128  }
   0xa   :  { %s62_s29 = sshll.u32 %s2516_s0, 4  ;;  %s2518_s11 = smov 8   ;;  %s63_s29 = int_to_ptr.vmem [resolvable:$true] %s62_s29 }
   0xb   :  { %68 = dma.hbm_to_vmem [thread:$0]  %s61_s28, 512, %s63_s29, [#allocation6], %s2517_s30, %s2517_s30, %s2518_s11  }
   0xc   :  { %2504 = dma.done.wait [#allocation3], 2048  }
   0xd   :  { %2505 = vsyncadd [#allocation3], 4294965248 }
   0xe   :  { %2506 = dma.done.wait [#allocation6], 1024  }
   0xf   :  { %2507 = vsyncadd [#allocation6], 4294966272  ;;  %v2519_v0 = vmov 0   ;;  %v95_v1 = vld [vmem:[#allocation2 + $0x60] sm:$0xff]  ;;  %v96_v2 = vld [vmem:[#allocation2 + $0x68] sm:$0xff]  ;;  %vm127_vm0 = vcmask 261120  }
  0x10   :  { %2213 = vset.pattern.permute.xlu0 %v2519_v0  ;;  %2214 = vset.pattern.permute.xlu1 %v2519_v0  ;;  %v97_v3 = vld [vmem:[#allocation2 + $0x70] sm:$0xff]  ;;  %v91_v4 = vld [vmem:[#allocation2 + $0x40] sm:$0xff]  ;;  %v92_v5 = vld [vmem:[#allocation2 + $0x48] sm:$0xff]  ;;  %vm590_vm10 = vcmask 130048   ;;  %s2521_s30 = smov 113   ;;  %s2522_s11 = smov 127  }
  0x11   :  { %2215 = vset.pattern.permute.xlu2 %v2519_v0  ;;  %152 = vmatpush.msra.mxu0 %v95_v1  ;;  %v93_v6 = vld [vmem:[#allocation2 + $0x50] sm:$0xff]  ;;  %v87_v7 = vld [vmem:[#allocation2 + $0x20] sm:$0xff]  ;;  %v88_v8 = vld [vmem:[#allocation2 + $0x28] sm:$0xff]  ;;  %s2523_s8 = smov 15   ;;  %s2524_s12 = smov 1  }
  0x12   :  { %2191 = vmatpush.msra.mxu3 %v95_v1  ;;  %181 = vmatpush.msra.mxu1 %v96_v2  ;;  %v89_v9 = vld [vmem:[#allocation2 + $0x30] sm:$0xff]  ;;  %v83_v10 = vld [vmem:[#allocation2] sm:$0xff]  ;;  %v84_v11 = vld [vmem:[#allocation2 + $0x8] sm:$0xff]  ;;  %s2525_s13 = smov 111   ;;  %s2526_s14 = smov 17  }
  0x13   :  { %210 = vmatpush.msra.mxu2 %v97_v3  ;;  %153 = vmatpush.msra.mxu0 %v91_v4  ;;  %v85_v12 = vld [vmem:[#allocation2 + $0x10] sm:$0xff]  ;;  %v99_v13 = vld [vmem:[%s4065_s2] sm:$0xff]  ;;  %v104_v15 = vld [vmem:[%s4066_s3 + $0x8] sm:$0xff]  ;;  %s2074_s23 = sshll.u32 %s4073_s10, 4  ;;  %s2075_s23 = int_to_ptr.hbm [resolvable:$true] %s2074_s23 }
  0x14   :  { %2192 = vmatpush.msra.mxu3 %v91_v4  ;;  %182 = vmatpush.msra.mxu1 %v92_v5  ;;  %v101_v14 = vld [vmem:[%s4065_s2 + $0x10] sm:$0xff]  ;;  %v98_v16 = vld [vmem:[#allocation2 + $0x78] sm:$0xff]  ;;  %v100_v19 = vld [vmem:[%s4065_s2 + $0x8] sm:$0xff] }
  0x15   :  { %211 = vmatpush.msra.mxu2 %v93_v6  ;;  %154 = vmatpush.msra.mxu0 %v87_v7  ;;  %v94_v17 = vld [vmem:[#allocation2 + $0x58] sm:$0xff]  ;;  %v103_v21 = vld [vmem:[%s4066_s3] sm:$0xff]  ;;  %v579_v39 = vld [vmem:[%s4068_s5 + $0x8] sm:$0xff] }
  0x16   :  { %2193 = vmatpush.msra.mxu3 %v87_v7  ;;  %183 = vmatpush.msra.mxu1 %v88_v8  ;;  %v90_v18 = vld [vmem:[#allocation2 + $0x38] sm:$0xff] }
  0x17   :  { %212 = vmatpush.msra.mxu2 %v89_v9  ;;  %155 = vmatpush.msra.mxu0 %v83_v10  ;;  %v102_v20 = vld [vmem:[%s4065_s2 + $0x18] sm:$0xff] }
  0x18   :  { %2194 = vmatpush.msra.mxu3 %v83_v10  ;;  %184 = vmatpush.msra.mxu1 %v84_v11  ;;  %v86_v22 = vld [vmem:[#allocation2 + $0x18] sm:$0xff] }
  0x19   :  { %213 = vmatpush.msra.mxu2 %v85_v12  ;;  %2088 = vmatmul.msk.f32.vlgmr.msra.gmra.mxu0 %vm127_vm0, %v99_v13 }
  0x1a   :  { %2090 = vmatmul.msk.f32.vlgmr.msra.gmra.mxu3 %vm127_vm0, %v101_v14  ;;  %2092 = vmatmul.msk.f32.vlgmr.msra.gmra.mxu1 %vm127_vm0, %v99_v13 }
  0x1b   :  { %2096 = vmatmul.msk.f32.vlgmr.msra.gmra.mxu2 %vm127_vm0, %v99_v13  ;;  %114 = vperm.xlu0 %2213, %v104_v15  }
  0x1c   :  { %239 = vmatpush.msrb.mxu3 %v98_v16  ;;  %587 = vperm.xlu1 %2214, %v579_v39   ;;  %v578_v16 = vld [vmem:[%s4068_s5] sm:$0xff] }
  0x1e   :  { %240 = vmatpush.msrb.mxu3 %v94_v17 }
  0x20   :  { %241 = vmatpush.msrb.mxu3 %v90_v18 }
  0x21   :  { %2089 = vmatmul.msk.f32.gmra.mxu0 %vm127_vm0, %v100_v19 }
  0x22   :  { %2091 = vmatmul.msk.f32.gmra.mxu3 %vm127_vm0, %v102_v20  ;;  %2093 = vmatmul.msk.f32.gmra.mxu1 %vm127_vm0, %v100_v19 }
  0x23   :  { %2097 = vmatmul.msk.f32.gmra.mxu2 %vm127_vm0, %v100_v19  ;;  %109 = vperm.xlu0 %2213, %v103_v21  }
  0x24   :  { %242 = vmatpush.msrb.mxu3 %v86_v22  ;;  %582 = vperm.xlu1 %2214, %v578_v16  }
  0x2a   :  { %2100 = vmatmul.msk.f32.vlgmr.msrb.gmra.mxu3 %vm127_vm0, %v99_v13  ;;  %2094 = vmatmul.msk.f32.gmra.mxu1 %vm127_vm0, %v101_v14 }
  0x2b   :  { %2098 = vmatmul.msk.f32.gmra.mxu2 %vm127_vm0, %v101_v14 }
  0x32   :  { %2101 = vmatmul.msk.f32.gmra.mxu3 %vm127_vm0, %v100_v19  ;;  %2095 = vmatmul.msk.f32.gmra.mxu1 %vm127_vm0, %v102_v20 }
  0x33   :  { %2099 = vmatmul.msk.f32.gmra.mxu2 %vm127_vm0, %v102_v20 }
  0x3a   :  { %2102 = vmatmul.msk.f32.gmra.mxu3 %vm127_vm0, %v101_v14 }
  0x42   :  { %2103 = vmatmul.msk.f32.gmra.mxu3 %vm127_vm0, %v102_v20 }
  0x8d   :  { %v2630_v23 = vpop.permute.xlu0 %114 }
  0x95   :  { %v110_v24 = vpop.permute.xlu0 %109 }
  0x96   :  { %v157_v25 = vpop.f32.mrf.mxu0 }
  0x97   :  { %v2632_v26 = vadd.f32 %v157_v25, %v110_v24  ;;  %v186_v27 = vpop.f32.mrf.mxu1 }
  0x98   :  { %v2634_v28 = vadd.f32 %v186_v27, %v110_v24 }
  0x99   :  { %v2104_v29 = vmul.f32 -1.442695, %v2632_v26 }
  0x9a   :  { %v2105_v30 = vmul.f32 -1.442695, %v2634_v28 }
  0x9b   :  { %2216 = vpow2.f32 %v2104_v29 }
  0x9c   :  { %2218 = vpow2.f32 %v2105_v30 }
  0x9d   :  { %v2638_v31 = vpop.f32.mrf.mxu3 }
  0x9e   :  { %4095 = vst [vmem:[#allocation12_spill] sm:$0xff] %v2638_v31  ;;  %v215_v32 = vpop.f32.mrf.mxu2  ;;  %v160_v34 = vpop.f32.mrf.mxu0 }
  0x9f   :  { %v2640_v33 = vadd.f32 %v215_v32, %v110_v24  ;;  %v2643_v35 = vadd.f32 %v160_v34, %v2630_v23  ;;  %v189_v36 = vpop.f32.mrf.mxu1 }
  0xa0   :  { %v2647_v38 = vadd.f32 %v189_v36, %v2630_v23 }
  0xa1   :  { %v2106_v37 = vmul.f32 -1.442695, %v2640_v33  ;;  %v2217_v40 = vpop.eup %2216  ;;  %v2108_v41 = vmul.f32 -1.442695, %v2643_v35 }
  0xa2   :  { %v2219_v42 = vpop.eup %2218  ;;  %v2653_v43 = vadd.f32 1.0, %v2217_v40  ;;  %v2109_v44 = vmul.f32 -1.442695, %v2647_v38 }
  0xa3   :  { %2220 = vpow2.f32 %v2106_v37  ;;  %v2656_v45 = vadd.f32 1.0, %v2219_v42 }
  0xa4   :  { %2222 = vpow2.f32 %v2108_v41  ;;  %v329_v0 = vand.u32 2147483647, %v2653_v43  ;;  %v331_v1 = vand.u32 2147483648, %v2653_v43  ;;  %vm325_vm1 = vweird.f32 %v2653_v43 }
  0xa5   :  { %2224 = vrcp.f32 %v2653_v43  ;;  %v2659_v46 = vpop.f32.mrf.mxu3  ;;  %v346_v4 = vand.u32 2147483648, %v2656_v45  ;;  %vm340_vm2 = vweird.f32 %v2656_v45  ;;  %v344_v11 = vand.u32 2147483647, %v2656_v45 }
  0xa6   :  { %2226 = vrcp.f32 %v2656_v45  ;;  %v218_v47 = vpop.f32.mrf.mxu2  ;;  %vm2703_vm3 = vcmp.eq.f32.partialorder %v329_v0, 8.507059e+37  ;;  %v332_v15 = vor.u32 1.1754944e-38, %v331_v1 }
  0xa7   :  { %2228 = vpow2.f32 %v2109_v44  ;;  %v2663_v48 = vadd.f32 %v218_v47, %v2630_v23  ;;  %v2713_v19 = vor.u32 1.1754944e-38, %v346_v4  ;;  %vm2727_vm9 = vcmp.eq.f32.partialorder %v344_v11, 8.507059e+37 }
  0xa9   :  { %v2221_v49 = vpop.eup %2220  ;;  %v2110_v50 = vmul.f32 -1.442695, %v2663_v48 }
  0xaa   :  { %v2223_v51 = vpop.eup %2222  ;;  %v2666_v52 = vadd.f32 1.0, %v2221_v49 }
  0xab   :  { %v2668_v53 = vpop.eup %2224  ;;  %v2670_v54 = vadd.f32 1.0, %v2223_v51  ;;  %2230 = vpow2.f32 %v2110_v50 }
  0xac   :  { %v2672_v55 = vpop.eup %2226  ;;  %2232 = vrcp.f32 %v2666_v52  ;;  %v321_v56 = vmul.f32 %v2668_v53, %v2653_v43  ;;  %vm326_vm5 = vweird.f32 %v2668_v53  ;;  %vm355_vm11 = vweird.f32 %v2666_v52  ;;  %v2854_v43 = vpop.f32.mrf.mxu1 }
  0xad   :  { %v2229_v57 = vpop.eup %2228  ;;  %2234 = vrcp.f32 %v2670_v54  ;;  %v244_v58 = vpop.f32.mrf.mxu3  ;;  %v336_v62 = vmul.f32 %v2672_v55, %v2656_v45  ;;  %v389_v9 = vand.u32 2147483647, %v2670_v54  ;;  %v391_v10 = vand.u32 2147483648, %v2670_v54  ;;  %vm2738_vm12 = vmor %vm325_vm1, %vm326_vm5  ;;  %4118 = vst [vmem:[#allocation21_spill] sm:$0xff] %v2854_v43 }
  0xae   :  { %v2678_v59 = vadd.f32 1.0, %v2229_v57  ;;  %v2680_v60 = vadd.f32 %v244_v58, %v110_v24  ;;  %v322_v61 = vsub.f32 1.0, %v321_v56  ;;  %vm385_vm4 = vweird.f32 %v2670_v54 }
  0xaf   :  { %v337_v3 = vsub.f32 1.0, %v336_v62  ;;  %vm2719_vm6 = vcmp.eq.f32.partialorder %v389_v9, 8.507059e+37  ;;  %v392_v29 = vor.u32 1.1754944e-38, %v391_v10  ;;  %vm341_vm8 = vweird.f32 %v2672_v55  ;;  %v2791_v10 = vld [vmem:[%s4067_s4] sm:$0xff] }
  0xb0   :  { %2236 = vrcp.f32 %v2678_v59  ;;  %v2107_v63 = vmul.f32 -1.442695, %v2680_v60  ;;  %v323_v7 = vmul.f32 %v2668_v53, %v322_v61  ;;  %v404_v32 = vand.u32 2147483647, %v2678_v59  ;;  %vm2762_vm5 = vmor %vm340_vm2, %vm341_vm8 }
  0xb1   :  { %v2231_v2 = vpop.eup %2230  ;;  %v338_v18 = vmul.f32 %v2672_v55, %v337_v3  ;;  %v359_v44 = vand.u32 2147483647, %v2666_v52  ;;  %vm400_vm14 = vweird.f32 %v2678_v59  ;;  %v406_v56 = vand.u32 2147483648, %v2678_v59 }
  0xb2   :  { %v2689_v5 = vpop.eup %2232  ;;  %v2691_v6 = vadd.f32 1.0, %v2231_v2  ;;  %2238 = vpow2.f32 %v2107_v63  ;;  %v324_v24 = vadd.f32 %v2668_v53, %v323_v7  ;;  %vm2753_vm15 = vcmp.eq.f32.partialorder %v404_v32, 8.507059e+37 }
  0xb3   :  { %v2235_v8 = vpop.eup %2234  ;;  %v351_v12 = vmul.f32 %v2689_v5, %v2666_v52  ;;  %v339_v42 = vadd.f32 %v2672_v55, %v338_v18  ;;  %v407_v3 = vor.u32 1.1754944e-38, %v406_v56  ;;  %v2856_v56 = vpop.permute.xlu1 %587 }
  0xb4   :  { %2240 = vrcp.f32 %v2691_v6  ;;  %v381_v13 = vmul.f32 %v2235_v8, %v2670_v54  ;;  %vm386_vm7 = vweird.f32 %v2235_v8  ;;  %v328_v50 = vsel %vm2738_vm12, %v2668_v53, %v324_v24 }
  0xb5   :  { %v247_v17 = vpop.f32.mrf.mxu3  ;;  %v352_v25 = vsub.f32 1.0, %v351_v12  ;;  %vm387_vm13 = vmor %vm385_vm4, %vm386_vm7  ;;  %v333_v62 = vsel %vm2703_vm3, %v332_v15, %v328_v50  ;;  %v343_v63 = vsel %vm2762_vm5, %v2672_v55, %v339_v42  ;;  %vm356_vm4 = vweird.f32 %v2689_v5 }
  0xb6   :  { %v2237_v20 = vpop.eup %2236  ;;  %v2716_v21 = vadd.f32 %v247_v17, %v2630_v23  ;;  %v382_v22 = vsub.f32 1.0, %v381_v13  ;;  %v419_v4 = vand.u32 2147483647, %v2691_v6  ;;  %v421_v7 = vand.u32 2147483648, %v2691_v6  ;;  %vm2803_vm7 = vmor %vm355_vm11, %vm356_vm4 }
  0xb7   :  { %v396_v30 = vmul.f32 %v2237_v20, %v2678_v59  ;;  %v353_v51 = vmul.f32 %v2689_v5, %v352_v25  ;;  %vm401_vm1 = vweird.f32 %v2237_v20  ;;  %v348_v14 = vsel %vm2727_vm9, %v2713_v19, %v343_v63 }
  0xb8   :  { %v2239_v34 = vpop.eup %2238  ;;  %v2111_v36 = vmul.f32 -1.442695, %v2716_v21  ;;  %v383_v37 = vmul.f32 %v2235_v8, %v382_v22  ;;  %vm402_vm2 = vmor %vm400_vm14, %vm401_vm1  ;;  %vm360_vm9 = vcmp.eq.f32.partialorder %v359_v44, 8.507059e+37  ;;  %vm420_vm11 = vcmp.eq.f32.partialorder %v419_v4, 8.507059e+37 }
  0xb9   :  { %v2732_v39 = vadd.f32 1.0, %v2239_v34  ;;  %v397_v40 = vsub.f32 1.0, %v396_v30  ;;  %v354_v2 = vadd.f32 %v2689_v5, %v353_v51 }
  0xba   :  { %v2241_v47 = vpop.eup %2240  ;;  %2242 = vpow2.f32 %v2111_v36  ;;  %v384_v49 = vadd.f32 %v2235_v8, %v383_v37 }
  0xbb   :  { %2244 = vrcp.f32 %v2732_v39  ;;  %v398_v58 = vmul.f32 %v2237_v20, %v397_v40  ;;  %v411_v54 = vmul.f32 %v2241_v47, %v2691_v6  ;;  %vm416_vm3 = vweird.f32 %v2241_v47 }
  0xbc   :  { %v388_v57 = vsel %vm387_vm13, %v2235_v8, %v384_v49  ;;  %v361_v8 = vand.u32 2147483648, %v2666_v52  ;;  %v422_v52 = vor.u32 1.1754944e-38, %v421_v7  ;;  %vm370_vm13 = vweird.f32 %v2732_v39 }
  0xbd   :  { %v393_v61 = vsel %vm2719_vm6, %v392_v29, %v388_v57  ;;  %v399_v0 = vadd.f32 %v2237_v20, %v398_v58  ;;  %v412_v1 = vsub.f32 1.0, %v411_v54  ;;  %vm415_vm6 = vweird.f32 %v2691_v6  ;;  %v2858_v57 = vpop.f32.mrf.mxu1 }
  0xbe   :  { %v2776_v45 = vmul.f32 %v393_v61, %v2643_v35  ;;  %v2786_v35 = vmul.f32 %v333_v62, %v2632_v26  ;;  %v358_v6 = vsel %vm2803_vm7, %v2689_v5, %v354_v2  ;;  %vm417_vm8 = vmor %vm415_vm6, %vm416_vm3  ;;  %v362_v18 = vor.u32 1.1754944e-38, %v361_v8 }
  0xbf   :  { %v403_v9 = vsel %vm402_vm2, %v2237_v20, %v399_v0  ;;  %v413_v59 = vmul.f32 %v2241_v47, %v412_v1  ;;  %v374_v36 = vand.u32 2147483647, %v2732_v39 }
  0xc0   :  { %4108 = vst [vmem:[#allocation13_spill] sm:$0xff] %v2776_v45  ;;  %v2243_v55 = vpop.eup %2242  ;;  %611 = vmatpush.msrb.mxu0 %v2776_v45  ;;  %v408_v13 = vsel %vm2753_vm15, %v407_v3, %v403_v9  ;;  %v363_v24 = vsel %vm360_vm9, %v362_v18, %v358_v6 }
  0xc1   :  { %4109 = vst [vmem:[#allocation14_spill] sm:$0xff] %v2786_v35  ;;  %v2245_v11 = vpop.eup %2244  ;;  %v311_v12 = vadd.f32 1.0, %v2243_v55  ;;  %v2809_v16 = vmul.f32 %v408_v13, %v2647_v38  ;;  %v414_v17 = vadd.f32 %v2241_v47, %v413_v59  ;;  %v2819_v38 = vmul.f32 %v348_v14, %v2634_v28  ;;  %v577_v28 = vld [vmem:[%s4067_s4 + $0x8] sm:$0xff]  ;;  %s2520_s4 = smov 112  }
  0xc2   :  { %v366_v15 = vmul.f32 %v2245_v11, %v2732_v39  ;;  %612 = vmatpush.msrb.mxu0 %v2786_v35  ;;  %v2829_v27 = vmul.f32 %v363_v24, %v2640_v33  ;;  %vm371_vm12 = vweird.f32 %v2245_v11  ;;  %v376_v33 = vand.u32 2147483648, %v2732_v39 }
  0xc3   :  { %4112 = vst [vmem:[#allocation15_spill] sm:$0xff] %v2809_v16  ;;  %2246 = vrcp.f32 %v311_v12  ;;  %2120 = vmatmul.msk.f32.vlgmr.msrb.gmra.mxu0 %vm590_vm10, %v2791_v10  ;;  %634 = vmatpush.msrb.mxu1 %v2809_v16  ;;  %v418_v20 = vsel %vm417_vm8, %v2241_v47, %v414_v17  ;;  %v436_v34 = vand.u32 2147483648, %v311_v12  ;;  %v434_v23 = vand.u32 2147483647, %v311_v12  ;;  %vm372_vm15 = vmor %vm370_vm13, %vm371_vm12 }
  0xc4   :  { %v367_v19 = vsub.f32 1.0, %v366_v15  ;;  %4113 = vst [vmem:[#allocation16_spill] sm:$0xff] %v2819_v38  ;;  %v423_v22 = vsel %vm420_vm11, %v422_v52, %v418_v20  ;;  %vm430_vm1 = vweird.f32 %v311_v12  ;;  %v377_v42 = vor.u32 1.1754944e-38, %v376_v33 }
  0xc5   :  { %635 = vmatpush.msrb.mxu1 %v2819_v38  ;;  %v2823_v5 = vmul.f32 %v423_v22, %v2663_v48  ;;  %4115 = vst [vmem:[#allocation18_spill] sm:$0xff] %v2829_v27  ;;  %v437_v44 = vor.u32 1.1754944e-38, %v436_v34  ;;  %vm375_vm4 = vcmp.eq.f32.partialorder %v374_v36, 8.507059e+37  ;;  %vm435_vm2 = vcmp.eq.f32.partialorder %v434_v23, 8.507059e+37  ;;  %v2882_v36 = vpop.f32.mrf.mxu2 }
  0xc6   :  { %2122 = vmatmul.msk.f32.vlgmr.msrb.gmra.mxu1 %vm590_vm10, %v2791_v10  ;;  %v368_v25 = vmul.f32 %v2245_v11, %v367_v19  ;;  %4119 = vst [vmem:[#allocation22_spill] sm:$0xff] %v2882_v36 }
  0xc7   :  { %4114 = vst [vmem:[#allocation17_spill] sm:$0xff] %v2823_v5  ;;  %657 = vmatpush.msrb.mxu2 %v2823_v5 }
  0xc8   :  { %v369_v48 = vadd.f32 %v2245_v11, %v368_v25 }
  0xc9   :  { %v2247_v29 = vpop.eup %2246  ;;  %658 = vmatpush.msrb.mxu2 %v2829_v27 }
  0xca   :  { %v426_v30 = vmul.f32 %v2247_v29, %v311_v12  ;;  %2124 = vmatmul.msk.f32.vlgmr.msrb.gmra.mxu2 %vm590_vm10, %v2791_v10  ;;  %vm431_vm14 = vweird.f32 %v2247_v29  ;;  %v373_v40 = vsel %vm372_vm15, %v2245_v11, %v369_v48 }
  0xcb   :  { %2121 = vmatmul.msk.f32.gmra.mxu0 %vm590_vm10, %v577_v28  ;;  %vm432_vm5 = vmor %vm430_vm1, %vm431_vm14  ;;  %v378_v49 = vsel %vm375_vm4, %v377_v42, %v373_v40 }
  0xcc   :  { %v427_v32 = vsub.f32 1.0, %v426_v30  ;;  %v2847_v51 = vmul.f32 %v378_v49, %v2680_v60 }
  0xce   :  { %v428_v37 = vmul.f32 %v2247_v29, %v427_v32  ;;  %2123 = vmatmul.msk.f32.gmra.mxu1 %vm590_vm10, %v577_v28  ;;  %4117 = vst [vmem:[#allocation20_spill] sm:$0xff] %v2847_v51 }
  0xd0   :  { %v429_v41 = vadd.f32 %v2247_v29, %v428_v37 }
  0xd2   :  { %v433_v47 = vsel %vm432_vm5, %v2247_v29, %v429_v41  ;;  %2125 = vmatmul.msk.f32.gmra.mxu2 %vm590_vm10, %v577_v28 }
  0xd3   :  { %v438_v50 = vsel %vm435_vm2, %v437_v44, %v433_v47  ;;  %v2892_v44 = vpop.f32.mrf.mxu2 }
  0xd4   :  { %v2844_v39 = vmul.f32 %v438_v50, %v2716_v21  ;;  %v2860_v21 = vpop.permute.xlu1 %582 }
  0xd6   :  { %4116 = vst [vmem:[#allocation19_spill] sm:$0xff] %v2844_v39  ;;  %680 = vmatpush.msra.mxu3 %v2844_v39  ;;  %v106_v39 = vld [vmem:[%s4066_s3 + $0x18] sm:$0xff] }
  0xd8   :  { %681 = vmatpush.msra.mxu3 %v2847_v51 }
  0xd9   :  { %2126 = vmatmul.msk.f32.vlgmr.msra.gmra.mxu3 %vm590_vm10, %v2791_v10 }
  0xe1   :  { %2127 = vmatmul.msk.f32.gmra.mxu3 %vm590_vm10, %v577_v28 }
 0x140   :  { %v614_v58 = vpop.f32.mrf.mxu0 }
 0x141   :  { %v615_v60 = vadd.f32 %v614_v58, %v2860_v21 }
 0x143   :  { %v2128_v53 = vmul.f32 -1.442695, %v615_v60  ;;  %v637_v54 = vpop.f32.mrf.mxu1 }
 0x144   :  { %v638_v61 = vadd.f32 %v637_v54, %v2860_v21  ;;  %v2900_v54 = vpop.f32.mrf.mxu3 }
 0x145   :  { %2248 = vpow2.f32 %v2128_v53  ;;  %4120 = vst [vmem:[#allocation23_spill] sm:$0xff] %v2900_v54 }
 0x146   :  { %v2129_v62 = vmul.f32 -1.442695, %v638_v61 }
 0x148   :  { %2250 = vpow2.f32 %v2129_v62  ;;  %v617_v12 = vpop.f32.mrf.mxu0 }
 0x149   :  { %v2869_v17 = vadd.f32 %v617_v12, %v2856_v56 }
 0x14b   :  { %v2249_v63 = vpop.eup %2248  ;;  %v640_v1 = vpop.f32.mrf.mxu1  ;;  %v2132_v29 = vmul.f32 -1.442695, %v2869_v17 }
 0x14c   :  { %v713_v0 = vadd.f32 1.0, %v2249_v63  ;;  %v2865_v3 = vadd.f32 %v640_v1, %v2856_v56 }
 0x14e   :  { %2252 = vrcp.f32 %v713_v0  ;;  %v2251_v2 = vpop.eup %2250  ;;  %v2133_v7 = vmul.f32 -1.442695, %v2865_v3  ;;  %v730_v59 = vand.u32 2147483647, %v713_v0  ;;  %v732_v11 = vand.u32 2147483648, %v713_v0 }
 0x14f   :  { %v714_v4 = vadd.f32 1.0, %v2251_v2  ;;  %vm726_vm6 = vweird.f32 %v713_v0 }
 0x150   :  { %vm731_vm8 = vcmp.eq.f32.partialorder %v730_v59, 8.507059e+37  ;;  %v733_v6 = vor.u32 1.1754944e-38, %v732_v11 }
 0x151   :  { %2254 = vrcp.f32 %v714_v4  ;;  %v747_v52 = vand.u32 2147483648, %v714_v4  ;;  %v745_v22 = vand.u32 2147483647, %v714_v4  ;;  %vm741_vm11 = vweird.f32 %v714_v4 }
 0x152   :  { %2256 = vpow2.f32 %v2133_v7 }
 0x153   :  { %v748_v30 = vor.u32 1.1754944e-38, %v747_v52  ;;  %vm746_vm13 = vcmp.eq.f32.partialorder %v745_v22, 8.507059e+37  ;;  %2258 = vpow2.f32 %v2132_v29 }
 0x154   :  { %v2253_v8 = vpop.eup %2252 }
 0x155   :  { %v722_v55 = vmul.f32 %v2253_v8, %v713_v0  ;;  %vm727_vm3 = vweird.f32 %v2253_v8 }
 0x156   :  { %vm728_vm7 = vmor %vm726_vm6, %vm727_vm3 }
 0x157   :  { %v723_v9 = vsub.f32 1.0, %v722_v55  ;;  %v2255_v10 = vpop.eup %2254 }
 0x158   :  { %v737_v14 = vmul.f32 %v2255_v10, %v714_v4  ;;  %v2257_v18 = vpop.eup %2256  ;;  %vm742_vm9 = vweird.f32 %v2255_v10 }
 0x159   :  { %v724_v13 = vmul.f32 %v2253_v8, %v723_v9  ;;  %vm743_vm12 = vmor %vm741_vm11, %vm742_vm9  ;;  %v718_v48 = vadd.f32 1.0, %v2257_v18  ;;  %v2259_v37 = vpop.eup %2258 }
 0x15a   :  { %v738_v15 = vsub.f32 1.0, %v737_v14  ;;  %v717_v40 = vadd.f32 1.0, %v2259_v37 }
 0x15b   :  { %v725_v26 = vadd.f32 %v2253_v8, %v724_v13  ;;  %2260 = vrcp.f32 %v718_v48  ;;  %vm801_vm15 = vweird.f32 %v718_v48  ;;  %v805_v53 = vand.u32 2147483647, %v718_v48 }
 0x15c   :  { %v739_v20 = vmul.f32 %v2255_v10, %v738_v15  ;;  %2262 = vrcp.f32 %v717_v40  ;;  %v792_v9 = vand.u32 2147483648, %v717_v40  ;;  %vm786_vm2 = vweird.f32 %v717_v40 }
 0x15d   :  { %v729_v19 = vsel %vm728_vm7, %v2253_v8, %v725_v26  ;;  %vm806_vm5 = vcmp.eq.f32.partialorder %v805_v53, 8.507059e+37  ;;  %v790_v59 = vand.u32 2147483647, %v717_v40 }
 0x15e   :  { %v734_v24 = vsel %vm731_vm8, %v733_v6, %v729_v19  ;;  %v740_v28 = vadd.f32 %v2255_v10, %v739_v20 }
 0x15f   :  { %v2871_v25 = vmul.f32 %v734_v24, %v615_v60  ;;  %v807_v60 = vand.u32 2147483648, %v718_v48  ;;  %vm791_vm6 = vcmp.eq.f32.partialorder %v790_v59, 8.507059e+37 }
 0x160   :  { %v744_v32 = vsel %vm743_vm12, %v2255_v10, %v740_v28  ;;  %v2919_v10 = vpop.f32.mrf.mxu3 }
 0x161   :  { %1114 = vrot.lane.b32.xlu1 %v2871_v25, %s2520_s4  ;;  %v749_v33 = vsel %vm746_vm13, %v748_v30, %v744_v32  ;;  %v2261_v23 = vpop.eup %2260  ;;  %v808_v0 = vor.u32 1.1754944e-38, %v807_v60 }
 0x162   :  { %v2876_v34 = vmul.f32 %v749_v33, %v638_v61  ;;  %v797_v41 = vmul.f32 %v2261_v23, %v718_v48  ;;  %v2263_v49 = vpop.eup %2262  ;;  %vm802_vm14 = vweird.f32 %v2261_v23  ;;  %v660_v61 = vpop.f32.mrf.mxu2 }
 0x163   :  { %v782_v50 = vmul.f32 %v2263_v49, %v717_v40  ;;  %vm803_vm1 = vmor %vm801_vm15, %vm802_vm14  ;;  %v2907_v1 = vadd.f32 %v660_v61, %v2860_v21  ;;  %vm787_vm4 = vweird.f32 %v2263_v49 }
 0x164   :  { %1074 = vrot.lane.b32.xlu2 %v2876_v34, %s2521_s30  ;;  %1118 = vrot.lane.b32.xlu0 %v2876_v34, %s2520_s4  ;;  %v798_v42 = vsub.f32 1.0, %v797_v41  ;;  %vm788_vm3 = vmor %vm786_vm2, %vm787_vm4 }
 0x165   :  { %v783_v62 = vsub.f32 1.0, %v782_v50  ;;  %v2130_v8 = vmul.f32 -1.442695, %v2907_v1 }
 0x166   :  { %v799_v47 = vmul.f32 %v2261_v23, %v798_v42 }
 0x167   :  { %v784_v4 = vmul.f32 %v2263_v49, %v783_v62  ;;  %2264 = vpow2.f32 %v2130_v8 }
 0x168   :  { %v800_v58 = vadd.f32 %v2261_v23, %v799_v47  ;;  %v683_v52 = vpop.f32.mrf.mxu3 }
 0x169   :  { %1070 = vrot.lane.b32.xlu1 %v2871_v25, %s2521_s30  ;;  %v785_v55 = vadd.f32 %v2263_v49, %v784_v4  ;;  %v2937_v19 = vadd.f32 %v683_v52, %v2860_v21 }
 0x16a   :  { %v804_v63 = vsel %vm803_vm1, %v2261_v23, %v800_v58  ;;  %v663_v13 = vpop.f32.mrf.mxu2 }
 0x16b   :  { %v809_v2 = vsel %vm806_vm5, %v808_v0, %v804_v63  ;;  %v789_v11 = vsel %vm788_vm3, %v2263_v49, %v785_v55  ;;  %v2931_v15 = vadd.f32 %v663_v13, %v2856_v56 }
 0x16c   :  { %1030 = vrot.lane.b32.xlu2 %v2876_v34, %s2522_s11  ;;  %1026 = vrot.lane.b32.xlu0 %v2871_v25, %s2522_s11  ;;  %v2912_v7 = vmul.f32 %v809_v2, %v2865_v3  ;;  %v793_v3 = vor.u32 1.1754944e-38, %v792_v9 }
 0x16d   :  { %v2265_v14 = vpop.eup %2264  ;;  %v2134_v18 = vmul.f32 -1.442695, %v2931_v15 }
 0x16e   :  { %v794_v12 = vsel %vm791_vm6, %v793_v3, %v789_v11  ;;  %v715_v6 = vadd.f32 1.0, %v2265_v14 }
 0x16f   :  { %v2928_v26 = vmul.f32 %v794_v12, %v2869_v17  ;;  %v2131_v17 = vmul.f32 -1.442695, %v2937_v19 }
 0x170   :  { %2266 = vrcp.f32 %v715_v6  ;;  %v686_v28 = vpop.f32.mrf.mxu3  ;;  %vm756_vm8 = vweird.f32 %v715_v6  ;;  %v760_v41 = vand.u32 2147483647, %v715_v6 }
 0x171   :  { %942 = vrot.lane.b32.xlu1 %v2876_v34, %s2523_s8  ;;  %2268 = vpow2.f32 %v2134_v18  ;;  %v2953_v48 = vadd.f32 %v686_v28, %v2856_v56  ;;  %v762_v56 = vand.u32 2147483648, %v715_v6 }
 0x172   :  { %2270 = vpow2.f32 %v2131_v17  ;;  %vm761_vm11 = vcmp.eq.f32.partialorder %v760_v41, 8.507059e+37 }
 0x173   :  { %v2135_v37 = vmul.f32 -1.442695, %v2953_v48  ;;  %v763_v50 = vor.u32 1.1754944e-38, %v762_v56 }
 0x174   :  { %982 = vrot.lane.b32.xlu2 %v2871_v25, %s2524_s12  ;;  %986 = vrot.lane.b32.xlu0 %v2876_v34, %s2524_s12 }
 0x176   :  { %v2267_v20 = vpop.eup %2266 }
 0x177   :  { %v2269_v22 = vpop.eup %2268  ;;  %v752_v24 = vmul.f32 %v2267_v20, %v715_v6  ;;  %vm757_vm7 = vweird.f32 %v2267_v20 }
 0x178   :  { %v719_v21 = vadd.f32 1.0, %v2269_v22  ;;  %v2271_v29 = vpop.eup %2270  ;;  %vm758_vm9 = vmor %vm756_vm8, %vm757_vm7 }
 0x179   :  { %1162 = vrot.lane.b32.xlu1 %v2876_v34, %s2525_s13  ;;  %v753_v30 = vsub.f32 1.0, %v752_v24  ;;  %v716_v32 = vadd.f32 1.0, %v2271_v29 }
 0x17a   :  { %2272 = vrcp.f32 %v719_v21  ;;  %v822_v55 = vand.u32 2147483648, %v719_v21  ;;  %vm816_vm13 = vweird.f32 %v719_v21 }
 0x17b   :  { %v754_v33 = vmul.f32 %v2267_v20, %v753_v30  ;;  %2274 = vrcp.f32 %v716_v32  ;;  %v777_v12 = vand.u32 2147483648, %v716_v32  ;;  %vm771_vm5 = vweird.f32 %v716_v32 }
 0x17c   :  { %849 = vrot.lane.b32.xlu2 %v2871_v25, %s2526_s14  ;;  %938 = vrot.lane.b32.xlu0 %v2871_v25, %s2523_s8  ;;  %2276 = vpow2.f32 %v2135_v37  ;;  %v823_v3 = vor.u32 1.1754944e-38, %v822_v55  ;;  %v775_v13 = vand.u32 2147483647, %v716_v32 }
 0x17d   :  { %v755_v23 = vadd.f32 %v2267_v20, %v754_v33  ;;  %v778_v17 = vor.u32 1.1754944e-38, %v777_v12 }
 0x17e   :  { %vm776_vm2 = vcmp.eq.f32.partialorder %v775_v13, 8.507059e+37 }
 0x17f   :  { %v759_v42 = vsel %vm758_vm9, %v2267_v20, %v755_v23 }
 0x180   :  { %v2273_v40 = vpop.eup %2272  ;;  %v764_v58 = vsel %vm761_vm11, %v763_v50, %v759_v42 }
 0x181   :  { %898 = vrot.lane.b32.xlu1 %v2876_v34, %s2512_s22  ;;  %v812_v47 = vmul.f32 %v2273_v40, %v719_v21  ;;  %v2275_v49 = vpop.eup %2274  ;;  %v2969_v62 = vmul.f32 %v764_v58, %v2907_v1  ;;  %vm817_vm12 = vweird.f32 %v2273_v40  ;;  %v820_v1 = vand.u32 2147483647, %v719_v21 }
 0x182   :  { %v2277_v60 = vpop.eup %2276  ;;  %v767_v61 = vmul.f32 %v2275_v49, %v716_v32  ;;  %vm818_vm14 = vmor %vm816_vm13, %vm817_vm12  ;;  %vm772_vm15 = vweird.f32 %v2275_v49 }
 0x183   :  { %v813_v53 = vsub.f32 1.0, %v812_v47  ;;  %v720_v63 = vadd.f32 1.0, %v2277_v60  ;;  %vm821_vm1 = vcmp.eq.f32.partialorder %v820_v1, 8.507059e+37  ;;  %vm773_vm4 = vmor %vm771_vm5, %vm772_vm15 }
 0x184   :  { %1120 = vrot.lane.b32.xlu2 %v2912_v7, %s2520_s4  ;;  %894 = vrot.lane.b32.xlu0 %v2871_v25, %s2512_s22  ;;  %v768_v2 = vsub.f32 1.0, %v767_v61 }
 0x185   :  { %v814_v0 = vmul.f32 %v2273_v40, %v813_v53  ;;  %2278 = vrcp.f32 %v720_v63  ;;  %v837_v30 = vand.u32 2147483648, %v720_v63  ;;  %vm831_vm6 = vweird.f32 %v720_v63 }
 0x186   :  { %v769_v8 = vmul.f32 %v2275_v49, %v768_v2  ;;  %v835_v32 = vand.u32 2147483647, %v720_v63 }
 0x187   :  { %v815_v4 = vadd.f32 %v2273_v40, %v814_v0  ;;  %v838_v37 = vor.u32 1.1754944e-38, %v837_v30  ;;  %v1207_v30 = vld [vmem:[%s4070_s7 + $0x8] sm:$0xff] }
 0x188   :  { %v770_v59 = vadd.f32 %v2275_v49, %v769_v8  ;;  %vm836_vm8 = vcmp.eq.f32.partialorder %v835_v32, 8.507059e+37  ;;  %v865_v8 = vlaneseq }
 0x189   :  { %1158 = vrot.lane.b32.xlu1 %v2871_v25, %s2525_s13  ;;  %v819_v9 = vsel %vm818_vm14, %v2273_v40, %v815_v4 }
 0x18a   :  { %v824_v6 = vsel %vm821_vm1, %v823_v3, %v819_v9  ;;  %v774_v52 = vsel %vm773_vm4, %v2275_v49, %v770_v59  ;;  %v3072_v1 = vand.u32 127, %v865_v8 }
 0x18b   :  { %v2279_v11 = vpop.eup %2278  ;;  %v2986_v20 = vmul.f32 %v824_v6, %v2931_v15  ;;  %v779_v22 = vsel %vm776_vm2, %v778_v17, %v774_v52 }
 0x18c   :  { %1076 = vrot.lane.b32.xlu2 %v2912_v7, %s2521_s30  ;;  %853 = vrot.lane.b32.xlu0 %v2876_v34, %s2526_s14  ;;  %v827_v18 = vmul.f32 %v2279_v11, %v720_v63  ;;  %v2993_v21 = vmul.f32 %v779_v22, %v2937_v19  ;;  %vm832_vm3 = vweird.f32 %v2279_v11  ;;  %vm1130_vm9 = vcmp.lt.s32.totalorder %v3072_v1, 112 }
 0x18d   :  { %vm833_vm7 = vmor %vm831_vm6, %vm832_vm3  ;;  %vm998_vm11 = vcmp.lt.s32.totalorder %v3072_v1, 1  ;;  %vm1086_vm12 = vcmp.lt.s32.totalorder %v3072_v1, 113  ;;  %vm1042_vm13 = vcmp.lt.s32.totalorder %v3072_v1, 127  ;;  %vm1174_vm14 = vcmp.lt.s32.totalorder %v3072_v1, 111 }
 0x18e   :  { %v828_v24 = vsub.f32 1.0, %v827_v18  ;;  %4121 = vst [vmem:[#allocation24_spill] sm:$0xff] %v2993_v21  ;;  %v105_v18 = vld [vmem:[%s4066_s3 + $0x10] sm:$0xff]  ;;  %vm954_vm15 = vcmp.lt.s32.totalorder %v3072_v1, 15  ;;  %vm910_vm1 = vcmp.lt.s32.totalorder %v3072_v1, 16  ;;  %vm867_vm5 = vcmp.lt.s32.totalorder %v3072_v1, 17 }
 0x190   :  { %v829_v29 = vmul.f32 %v2279_v11, %v828_v24 }
 0x191   :  { %1116 = vrot.lane.b32.xlu1 %v2928_v26, %s2520_s4 }
 0x192   :  { %v830_v15 = vadd.f32 %v2279_v11, %v829_v29  ;;  %v3116_v29 = vld [vmem:[%s4064_s1 + $0x18] sm:$0xf] }
 0x193   :  { %v1098_v32 = vperm.slane %v3116_v29, 0 }
 0x194   :  { %1032 = vrot.lane.b32.xlu2 %v2912_v7, %s2522_s11  ;;  %988 = vrot.lane.b32.xlu0 %v2912_v7, %s2524_s12  ;;  %v834_v19 = vsel %vm833_vm7, %v2279_v11, %v830_v15  ;;  %v3085_v11 = vld [vmem:[%s4064_s1 + $0x1c] sm:$0xf] }
 0x195   :  { %v839_v40 = vsel %vm836_vm8, %v838_v37, %v834_v19  ;;  %v1142_v3 = vperm.slane %v3085_v11, 0  ;;  %v3134_v37 = vld [vmem:[%s4064_s1 + $0x14] sm:$0xf] }
 0x196   :  { %v3014_v56 = vmul.f32 %v839_v40, %v2953_v48 }
 0x198   :  { %4122 = vst [vmem:[#allocation25_spill] sm:$0xff] %v3014_v56 }
 0x199   :  { %1072 = vrot.lane.b32.xlu1 %v2928_v26, %s2521_s30 }
 0x19c   :  { %1028 = vrot.lane.b32.xlu2 %v2928_v26, %s2522_s11  ;;  %944 = vrot.lane.b32.xlu0 %v2912_v7, %s2523_s8 }
 0x1a1   :  { %1164 = vrot.lane.b32.xlu1 %v2912_v7, %s2525_s13 }
 0x1a4   :  { %984 = vrot.lane.b32.xlu2 %v2928_v26, %s2524_s12  ;;  %896 = vrot.lane.b32.xlu0 %v2928_v26, %s2512_s22 }
 0x1a9   :  { %900 = vrot.lane.b32.xlu1 %v2912_v7, %s2512_s22 }
 0x1ac   :  { %940 = vrot.lane.b32.xlu2 %v2928_v26, %s2523_s8  ;;  %1160 = vrot.lane.b32.xlu0 %v2928_v26, %s2525_s13 }
 0x1b1   :  { %851 = vrot.lane.b32.xlu1 %v2928_v26, %s2526_s14 }
 0x1b4   :  { %855 = vrot.lane.b32.xlu2 %v2912_v7, %s2526_s14  ;;  %1078 = vrot.lane.b32.xlu0 %v2969_v62, %s2521_s30 }
 0x1b9   :  { %1122 = vrot.lane.b32.xlu1 %v2969_v62, %s2520_s4 }
 0x1bc   :  { %1166 = vrot.lane.b32.xlu2 %v2969_v62, %s2525_s13  ;;  %1034 = vrot.lane.b32.xlu0 %v2969_v62, %s2522_s11 }
 0x1be   :  { %v2981_v14 = vpop.permute.xlu2 %1074 }
 0x1c1   :  { %990 = vrot.lane.b32.xlu1 %v2969_v62, %s2524_s12 }
 0x1c4   :  { %1124 = vrot.lane.b32.xlu2 %v2986_v20, %s2520_s4  ;;  %1080 = vrot.lane.b32.xlu0 %v2986_v20, %s2521_s30 }
 0x1c6   :  { %v2995_v28 = vpop.permute.xlu2 %1030 }
 0x1c9   :  { %1126 = vrot.lane.b32.xlu1 %v2993_v21, %s2520_s4 }
 0x1cc   :  { %1168 = vrot.lane.b32.xlu2 %v2986_v20, %s2525_s13  ;;  %1036 = vrot.lane.b32.xlu0 %v2986_v20, %s2522_s11 }
 0x1ce   :  { %v3003_v33 = vpop.permute.xlu2 %982 }
 0x1d1   :  { %906 = vrot.lane.b32.xlu1 %v2993_v21, %s2512_s22 }
 0x1d3   :  { %v3007_v23 = vpop.permute.xlu1 %1114 }
 0x1d4   :  { %992 = vrot.lane.b32.xlu2 %v2986_v20, %s2524_s12  ;;  %948 = vrot.lane.b32.xlu0 %v2986_v20, %s2523_s8 }
 0x1d6   :  { %v3016_v41 = vpop.permute.xlu0 %1118  ;;  %v3018_v42 = vpop.permute.xlu2 %849 }
 0x1d7   :  { %v1135_v13 = vsel %vm1130_vm9, %v3007_v23, %v3016_v41 }
 0x1d8   :  { %v1150_v17 = vmul.f32 %v1142_v3, %v1135_v13 }
 0x1d9   :  { %1128 = vrot.lane.b32.xlu1 %v3014_v56, %s2520_s4 }
 0x1db   :  { %v3022_v47 = vpop.permute.xlu1 %1070 }
 0x1dc   :  { %1082 = vrot.lane.b32.xlu2 %v2993_v21, %s2521_s30  ;;  %1038 = vrot.lane.b32.xlu0 %v2993_v21, %s2522_s11  ;;  %v1091_v40 = vsel %vm1086_vm12, %v3022_v47, %v2981_v14 }
 0x1de   :  { %v3028_v49 = vpop.permute.xlu2 %1120  ;;  %v3030_v50 = vpop.permute.xlu0 %1026 }
 0x1df   :  { %4123 = vst [vmem:[#allocation26_spill] sm:$0xff] %v3030_v50 }
 0x1e1   :  { %1084 = vrot.lane.b32.xlu1 %v3014_v56, %s2521_s30 }
 0x1e3   :  { %v3034_v48 = vpop.permute.xlu1 %942 }
 0x1e4   :  { %994 = vrot.lane.b32.xlu2 %v2993_v21, %s2524_s12  ;;  %1040 = vrot.lane.b32.xlu0 %v3014_v56, %s2522_s11 }
 0x1e6   :  { %v3040_v58 = vpop.permute.xlu2 %1076  ;;  %v3042_v60 = vpop.permute.xlu0 %986 }
 0x1e9   :  { %996 = vrot.lane.b32.xlu1 %v3014_v56, %s2524_s12 }
 0x1eb   :  { %v3046_v53 = vpop.permute.xlu1 %1162 }
 0x1ec   :  { %950 = vrot.lane.b32.xlu2 %v2993_v21, %s2523_s8  ;;  %908 = vrot.lane.b32.xlu0 %v3014_v56, %s2512_s22 }
 0x1ee   :  { %v3052_v61 = vpop.permute.xlu2 %1032  ;;  %v3054_v63 = vpop.permute.xlu0 %938 }
 0x1f1   :  { %946 = vrot.lane.b32.xlu1 %v2969_v62, %s2523_s8 }
 0x1f3   :  { %v3058_v0 = vpop.permute.xlu1 %898 }
 0x1f4   :  { %861 = vrot.lane.b32.xlu2 %v2993_v21, %s2526_s14  ;;  %863 = vrot.lane.b32.xlu0 %v3014_v56, %s2526_s14 }
 0x1f6   :  { %v3064_v2 = vpop.permute.xlu2 %1028  ;;  %v3066_v4 = vpop.permute.xlu0 %894 }
 0x1f7   :  { %4124 = vst [vmem:[#allocation27_spill] sm:$0xff] %v3064_v2  ;;  %v1048_v13 = vsel %vm1042_vm13, %v3064_v2, %v3052_v61 }
 0x1f9   :  { %902 = vrot.lane.b32.xlu1 %v2969_v62, %s2512_s22 }
 0x1fb   :  { %v3070_v55 = vpop.permute.xlu1 %1158 }
 0x1fc   :  { %952 = vrot.lane.b32.xlu2 %v3014_v56, %s2523_s8  ;;  %1172 = vrot.lane.b32.xlu0 %v3014_v56, %s2525_s13 }
 0x1fe   :  { %v3078_v9 = vpop.permute.xlu2 %984  ;;  %v3080_v59 = vpop.permute.xlu0 %853 }
 0x1ff   :  { %4125 = vst [vmem:[#allocation28_spill] sm:$0xff] %v3080_v59 }
 0x201   :  { %857 = vrot.lane.b32.xlu1 %v2969_v62, %s2526_s14 }
 0x203   :  { %v3091_v12 = vpop.permute.xlu1 %1116 }
 0x204   :  { %v1136_v6 = vsel %vm1130_vm9, %v3091_v12, %v3028_v49  ;;  %904 = vrot.lane.b32.xlu2 %v2986_v20, %s2512_s22  ;;  %859 = vrot.lane.b32.xlu0 %v2986_v20, %s2526_s14 }
 0x205   :  { %v1154_v52 = vmul.f32 %v1142_v3, %v1136_v6  ;;  %v1581_v6 = vld [vmem:[%s4072_s9 + $0x8] sm:$0xff] }
 0x206   :  { %v3109_v22 = vpop.permute.xlu2 %940  ;;  %v3111_v24 = vpop.permute.xlu0 %988 }
 0x207   :  { %1224 = vmatpush.msra.mxu0 %v1154_v52  ;;  %v3122_v15 = vsel %vm998_vm11, %v3078_v9, %v3111_v24  ;;  %v1054_v52 = vperm.slane %v3134_v37, 0 }
 0x209   :  { %119 = vperm.xlu1 %2214, %v105_v18   ;;  %1225 = vmatpush.msra.mxu0 %v1150_v17  ;;  %v1106_v18 = vmul.f32 %v1098_v32, %v1091_v40 }
 0x20b   :  { %v3129_v19 = vpop.permute.xlu1 %1072 }
 0x20c   :  { %v1092_v8 = vsel %vm1086_vm12, %v3129_v19, %v3040_v58  ;;  %1170 = vrot.lane.b32.xlu2 %v2993_v21, %s2525_s13  ;;  %1215 = vperm.xlu0 %2213, %v1207_v30   ;;  %v1047_v30 = vsel %vm1042_vm13, %v3030_v50, %v2995_v28 }
 0x20d   :  { %v1110_v3 = vmul.f32 %v1098_v32, %v1092_v8  ;;  %v1066_v8 = vmul.f32 %v1054_v52, %v1048_v13  ;;  %v1580_v32 = vld [vmem:[%s4072_s9] sm:$0xff]  ;;  %v1062_v27 = vmul.f32 %v1054_v52, %v1047_v30  ;;  %v1583_v13 = vld [vmem:[%s4072_s9 + $0x18] sm:$0xff] }
 0x20e   :  { %v3155_v17 = vpop.permute.xlu2 %855  ;;  %v3157_v51 = vpop.permute.xlu0 %944 }
 0x20f   :  { %4126 = vst [vmem:[#allocation29_spill] sm:$0xff] %v3155_v17  ;;  %1226 = vmatpush.msra.mxu0 %v1110_v3 }
 0x211   :  { %1591 = vperm.xlu1 %2214, %v1581_v6   ;;  %1227 = vmatpush.msra.mxu0 %v1106_v18 }
 0x213   :  { %1228 = vmatpush.msra.mxu0 %v1066_v8  ;;  %v1165_v40 = vpop.permute.xlu1 %1164 }
 0x214   :  { %124 = vperm.xlu2 %2215, %v106_v39   ;;  %1586 = vperm.xlu0 %2213, %v1580_v32   ;;  %v3183_v39 = vld [vmem:[%s4064_s1 + $0x20] sm:$0xf] }
 0x215   :  { %1229 = vmatpush.msra.mxu0 %v1062_v27  ;;  %v1143_v27 = vperm.slane %v3085_v11, 1  ;;  %v1187_v38 = vperm.slane %v3183_v39, 1 }
 0x216   :  { %v3169_v3 = vpop.permute.xlu2 %1166  ;;  %v3171_v5 = vpop.permute.xlu0 %896 }
 0x217   :  { %1230 = vmatpush.msra.mxu0 %v2928_v26  ;;  %v1186_v26 = vperm.slane %v3183_v39, 0 }
 0x219   :  { %1231 = vmatpush.msra.mxu0 %v2871_v25  ;;  %v1179_v25 = vsel %vm1174_vm14, %v3070_v55, %v3046_v53 }
 0x21a   :  { %v1194_v35 = vmul.f32 %v1186_v26, %v1179_v25 }
 0x21b   :  { %v3178_v6 = vpop.permute.xlu1 %900 }
 0x21c   :  { %1601 = vperm.xlu0 %2213, %v1583_v13  }
 0x21e   :  { %v3188_v52 = vpop.permute.xlu2 %1124  ;;  %v3190_v18 = vpop.permute.xlu0 %1160 }
 0x21f   :  { %4127 = vst [vmem:[#allocation30_spill] sm:$0xff] %v3190_v18  ;;  %v1134_v30 = vsel %vm1130_vm9, %v3028_v49, %v3188_v52  ;;  %v1180_v8 = vsel %vm1174_vm14, %v3190_v18, %v1165_v40  ;;  %v1177_v49 = vsel %vm1174_vm14, %v3046_v53, %v3169_v3 }
 0x220   :  { %v1155_v32 = vmul.f32 %v1143_v27, %v1134_v30  ;;  %v1198_v13 = vmul.f32 %v1186_v26, %v1180_v8  ;;  %v1195_v30 = vmul.f32 %v1187_v38, %v1177_v49 }
 0x222   :  { %1261 = vmatpush.msra.mxu1 %v1198_v13  ;;  %1270 = vmatpush.msra.mxu2 %v1155_v32 }
 0x223   :  { %v3203_v45 = vpop.permute.xlu1 %851 }
 0x224   :  { %1262 = vmatpush.msra.mxu1 %v1194_v35 }
 0x226   :  { %v3206_v16 = vpop.permute.xlu2 %1168  ;;  %v3208_v21 = vpop.permute.xlu0 %1078 }
 0x227   :  { %4128 = vst [vmem:[#allocation31_spill] sm:$0xff] %v3206_v16  ;;  %v1178_v26 = vsel %vm1174_vm14, %v1165_v40, %v3206_v16  ;;  %v1099_v40 = vperm.slane %v3116_v29, 1 }
 0x228   :  { %v1199_v25 = vmul.f32 %v1187_v38, %v1178_v26 }
 0x22a   :  { %1307 = vmatpush.msrb.mxu3 %v1199_v25  ;;  %v3245_v25 = vld [vmem:[#allocation5 + $0x8] sm:$0xff] }
 0x22b   :  { %v1123_v8 = vpop.permute.xlu1 %1122  ;;  %4129 = vst [vmem:[#allocation32_spill] sm:$0xff] %v3245_v25  ;;  %2143 = vmatmul.msk.f32.vlgmr.msra.gmra.mxu1 %vm590_vm10, %v3245_v25 }
 0x22c   :  { %v1133_v35 = vsel %vm1130_vm9, %v3016_v41, %v1123_v8  ;;  %1308 = vmatpush.msrb.mxu3 %v1195_v30 }
 0x22d   :  { %v1151_v32 = vmul.f32 %v1143_v27, %v1133_v35  ;;  %v1089_v27 = vsel %vm1086_vm12, %v2981_v14, %v3208_v21  ;;  %2145 = vmatmul.msk.f32.vlgmr.msrb.gmra.mxu3 %vm590_vm10, %v3245_v25  ;;  %v1055_v14 = vperm.slane %v3134_v37, 1 }
 0x22e   :  { %v3220_v13 = vpop.permute.xlu2 %992  ;;  %v3222_v54 = vpop.permute.xlu0 %1034  ;;  %v1107_v30 = vmul.f32 %v1099_v40, %v1089_v27 }
 0x22f   :  { %1271 = vmatpush.msra.mxu2 %v1151_v32  ;;  %v3228_v53 = vsel %vm998_vm11, %v3111_v24, %v3220_v13 }
 0x233   :  { %v3230_v38 = vpop.permute.xlu1 %990 }
 0x236   :  { %v3233_v49 = vpop.permute.xlu2 %1082  ;;  %v3235_v41 = vpop.permute.xlu0 %1080 }
 0x237   :  { %v1090_v26 = vsel %vm1086_vm12, %v3040_v58, %v3235_v41  ;;  %v1045_v58 = vsel %vm1042_vm13, %v2995_v28, %v3222_v54  ;;  %v3281_v28 = vld [vmem:[%s4064_s1 + $0xc] sm:$0xf] }
 0x238   :  { %v1111_v24 = vmul.f32 %v1099_v40, %v1090_v26 }
 0x23a   :  { %1272 = vmatpush.msra.mxu2 %v1111_v24  ;;  %v3272_v24 = vld [vmem:[#allocation5 + $0x18] sm:$0xff] }
 0x23b   :  { %v3247_v35 = vpop.permute.xlu1 %1126  ;;  %4131 = vst [vmem:[#allocation34_spill] sm:$0xff] %v3272_v24  ;;  %2146 = vmatmul.msk.f32.gmra.mxu3 %vm590_vm10, %v3272_v24  ;;  %2144 = vmatmul.msk.f32.gmra.mxu1 %vm590_vm10, %v3272_v24 }
 0x23c   :  { %1273 = vmatpush.msra.mxu2 %v1107_v30  ;;  %v1063_v30 = vmul.f32 %v1055_v14, %v1045_v58 }
 0x23e   :  { %v3254_v32 = vpop.permute.xlu2 %994  ;;  %v3256_v36 = vpop.permute.xlu0 %1036 }
 0x23f   :  { %v3266_v40 = vsel %vm998_vm11, %v3230_v38, %v3254_v32  ;;  %v1046_v27 = vsel %vm1042_vm13, %v3052_v61, %v3256_v36  ;;  %v1011_v61 = vperm.slane %v3281_v28, 1 }
 0x240   :  { %4130 = vst [vmem:[#allocation33_spill] sm:$0xff] %v3266_v40  ;;  %v1067_v26 = vmul.f32 %v1055_v14, %v1046_v27  ;;  %v1003_v27 = vsel %vm998_vm11, %v3003_v33, %v3042_v60  ;;  %v1144_v40 = vperm.slane %v3085_v11, 2 }
 0x241   :  { %v1023_v24 = vmul.f32 %v1011_v61, %v3122_v15  ;;  %v1019_v31 = vmul.f32 %v1011_v61, %v1003_v27  ;;  %v959_v15 = vsel %vm954_vm15, %v3054_v63, %v3034_v48 }
 0x242   :  { %1274 = vmatpush.msra.mxu2 %v1067_v26  ;;  %v3299_v26 = vld [vmem:[%s4064_s1 + $0x8] sm:$0xf] }
 0x243   :  { %v3274_v43 = vpop.permute.xlu1 %906  ;;  %v967_v56 = vperm.slane %v3299_v26, 1 }
 0x244   :  { %1275 = vmatpush.msra.mxu2 %v1063_v30 }
 0x245   :  { %v975_v50 = vmul.f32 %v967_v56, %v959_v15 }
 0x246   :  { %v3287_v14 = vpop.permute.xlu2 %950  ;;  %v3289_v58 = vpop.permute.xlu0 %948  ;;  %1276 = vmatpush.msra.mxu2 %v2912_v7  ;;  %v960_v7 = vsel %vm954_vm15, %v3109_v22, %v3157_v51 }
 0x247   :  { %4132 = vst [vmem:[#allocation35_spill] sm:$0xff] %v3289_v58  ;;  %v3305_v30 = vsel %vm954_vm15, %v3157_v51, %v3289_v58  ;;  %v1131_v51 = vsel %vm1130_vm9, %v1123_v8, %v3247_v35  ;;  %v979_v61 = vmul.f32 %v967_v56, %v960_v7  ;;  %v916_v58 = vsel %vm910_vm1, %v3171_v5, %v3178_v6 }
 0x248   :  { %1277 = vmatpush.msra.mxu2 %v2876_v34  ;;  %v3324_v34 = vld [vmem:[%s4064_s1 + $0x4] sm:$0xf]  ;;  %v1152_v18 = vmul.f32 %v1144_v40, %v1131_v51  ;;  %v1100_v51 = vperm.slane %v3116_v29, 2 }
 0x249   :  { %v923_v2 = vperm.slane %v3324_v34, 1 }
 0x24a   :  { %1278 = vmatpush.msra.mxu2 %v1023_v24 }
 0x24b   :  { %v3315_v25 = vpop.permute.xlu1 %1128  ;;  %v935_v56 = vmul.f32 %v923_v2, %v916_v58  ;;  %v872_v58 = vsel %vm867_vm5, %v3018_v42, %v3080_v59  ;;  %v3377_v59 = vld [vmem:[#allocation5] sm:$0xff] }
 0x24c   :  { %v1132_v24 = vsel %vm1130_vm9, %v3188_v52, %v3315_v25  ;;  %1279 = vmatpush.msra.mxu2 %v1019_v31  ;;  %v915_v31 = vsel %vm910_vm1, %v3066_v4, %v3058_v0  ;;  %v3350_v52 = vld [vmem:[%s4064_s1] sm:$0xf] }
 0x24d   :  { %v1156_v27 = vmul.f32 %v1144_v40, %v1132_v24  ;;  %v873_v40 = vsel %vm867_vm5, %v3203_v45, %v3155_v17  ;;  %v931_v7 = vmul.f32 %v923_v2, %v915_v31  ;;  %v879_v15 = vperm.slane %v3350_v52, 1 }
 0x24e   :  { %v3339_v8 = vpop.permute.xlu2 %861  ;;  %v3341_v16 = vpop.permute.xlu0 %1038  ;;  %1280 = vmatpush.msra.mxu2 %v979_v61  ;;  %v1087_v2 = vsel %vm1086_vm12, %v3208_v21, %v3233_v49 }
 0x24f   :  { %1316 = vmatpush.msrb.mxu1 %v1156_v27  ;;  %v887_v27 = vmul.f32 %v879_v15, %v872_v58  ;;  %v1108_v17 = vmul.f32 %v1100_v51, %v1087_v2  ;;  %v1043_v21 = vsel %vm1042_vm13, %v3222_v54, %v3341_v16  ;;  %v1005_v58 = vsel %vm998_vm11, %v3254_v32, %v3003_v33 }
 0x250   :  { %1281 = vmatpush.msra.mxu2 %v975_v50  ;;  %v966_v32 = vperm.slane %v3299_v26, 0 }
 0x251   :  { %1317 = vmatpush.msrb.mxu1 %v1152_v18  ;;  %v891_v18 = vmul.f32 %v879_v15, %v873_v40  ;;  %v1010_v15 = vperm.slane %v3281_v28, 0 }
 0x252   :  { %1282 = vmatpush.msra.mxu2 %v935_v56 }
 0x253   :  { %v3359_v24 = vpop.permute.xlu1 %1084  ;;  %v1018_v33 = vmul.f32 %v1010_v15, %v1005_v58 }
 0x254   :  { %v1088_v50 = vsel %vm1086_vm12, %v3235_v41, %v3359_v24  ;;  %1283 = vmatpush.msra.mxu2 %v931_v7  ;;  %v1056_v41 = vperm.slane %v3134_v37, 2 }
 0x255   :  { %v1112_v61 = vmul.f32 %v1100_v51, %v1088_v50 }
 0x256   :  { %v3373_v31 = vpop.permute.xlu2 %952  ;;  %v3375_v56 = vpop.permute.xlu0 %1040  ;;  %1284 = vmatpush.msra.mxu2 %v891_v18  ;;  %v1064_v50 = vmul.f32 %v1056_v41, %v1043_v21  ;;  %v1012_v18 = vperm.slane %v3281_v28, 2  ;;  %v968_v21 = vperm.slane %v3299_v26, 2 }
 0x257   :  { %1318 = vmatpush.msrb.mxu1 %v1112_v61  ;;  %v1044_v40 = vsel %vm1042_vm13, %v3256_v36, %v3375_v56  ;;  %v962_v2 = vsel %vm954_vm15, %v3373_v31, %v3109_v22  ;;  %v1001_v22 = vsel %vm998_vm11, %v3042_v60, %v3230_v38 }
 0x258   :  { %1285 = vmatpush.msra.mxu2 %v887_v27  ;;  %v1068_v7 = vmul.f32 %v1056_v41, %v1044_v40  ;;  %v3412_v27 = vld [vmem:[#allocation5 + $0x10] sm:$0xff]  ;;  %v978_v41 = vmul.f32 %v966_v32, %v962_v2  ;;  %v1024_v40 = vmul.f32 %v1012_v18, %v3228_v53  ;;  %v1020_v38 = vmul.f32 %v1012_v18, %v1001_v22 }
 0x259   :  { %1286 = vmatmul.f32.vlgmr.msra.gmra.mxu2 %v3377_v59  ;;  %1319 = vmatpush.msrb.mxu1 %v1108_v17  ;;  %v917_v53 = vsel %vm910_vm1, %v3274_v43, %v3066_v4  ;;  %v1094_v22 = vsel %vm1086_vm12, %v3359_v24, %v3129_v19  ;;  %v1093_v19 = vsel %vm1086_vm12, %v3233_v49, %v3022_v47  ;;  %v1189_v24 = vperm.slane %v3183_v39, 3 }
 0x25b   :  { %v997_v51 = vpop.permute.xlu1 %996  ;;  %1320 = vmatpush.msrb.mxu1 %v1068_v7 }
 0x25c   :  { %v3397_v36 = vsel %vm998_vm11, %v3220_v13, %v997_v51  ;;  %v1006_v54 = vsel %vm998_vm11, %v997_v51, %v3078_v9  ;;  %v961_v9 = vsel %vm954_vm15, %v3287_v14, %v3054_v63  ;;  %v922_v63 = vperm.slane %v3324_v34, 0 }
 0x25d   :  { %v1022_v17 = vmul.f32 %v1010_v15, %v1006_v54  ;;  %1321 = vmatpush.msrb.mxu1 %v1064_v50  ;;  %v924_v51 = vperm.slane %v3324_v34, 2  ;;  %v878_v50 = vperm.slane %v3350_v52, 0 }
 0x25e   :  { %v3408_v61 = vpop.permute.xlu2 %904  ;;  %v3410_v13 = vpop.permute.xlu0 %908  ;;  %v930_v58 = vmul.f32 %v922_v63, %v917_v53 }
 0x25f   :  { %1232 = vmatpush.msra.mxu0 %v1022_v17  ;;  %1322 = vmatpush.msrb.mxu1 %v2986_v20  ;;  %v918_v7 = vsel %vm910_vm1, %v3410_v13, %v3171_v5  ;;  %v974_v20 = vmul.f32 %v966_v32, %v961_v9  ;;  %v914_v4 = vsel %vm910_vm1, %v3178_v6, %v3408_v61  ;;  %v1145_v32 = vperm.slane %v3085_v11, 3 }
 0x260   :  { %v934_v15 = vmul.f32 %v922_v63, %v918_v7  ;;  %v1138_v6 = vsel %vm1130_vm9, %v3315_v25, %v3091_v12  ;;  %v1101_v25 = vperm.slane %v3116_v29, 3  ;;  %v1188_v29 = vperm.slane %v3183_v39, 2 }
 0x261   :  { %1233 = vmatpush.msra.mxu0 %v1018_v33  ;;  %1289 = vmatmul.f32.gmra.mxu2 %v3412_v27  ;;  %v936_v33 = vmul.f32 %v924_v51, %v914_v4  ;;  %v4136_v4 = vld [vmem:[#allocation26_spill] sm:$0xff] }
 0x262   :  { %1323 = vmatpush.msrb.mxu1 %v2969_v62  ;;  %v980_v62 = vmul.f32 %v968_v21, %v3305_v30 }
 0x263   :  { %1234 = vmatpush.msra.mxu0 %v978_v41  ;;  %v3432_v60 = vpop.permute.xlu1 %946  ;;  %v1157_v41 = vmul.f32 %v1145_v32, %v1138_v6 }
 0x264   :  { %1324 = vmatpush.msrb.mxu1 %v1024_v40  ;;  %v957_v5 = vsel %vm954_vm15, %v3034_v48, %v3432_v60  ;;  %v874_v48 = vsel %vm867_vm5, %v3339_v8, %v3018_v42 }
 0x265   :  { %1235 = vmatpush.msra.mxu0 %v974_v20  ;;  %v976_v18 = vmul.f32 %v968_v21, %v957_v5  ;;  %v886_v9 = vmul.f32 %v878_v50, %v874_v48  ;;  %v1109_v5 = vmul.f32 %v1101_v25, %v1093_v19 }
 0x266   :  { %1325 = vmatpush.msrb.mxu1 %v1020_v38  ;;  %v1171_v54 = vpop.permute.xlu2 %1170  ;;  %v3449_v17 = vpop.permute.xlu0 %863  ;;  %v4133_v38 = vld [vmem:[#allocation31_spill] sm:$0xff] }
 0x267   :  { %1236 = vmatpush.msra.mxu0 %v934_v15  ;;  %v875_v30 = vsel %vm867_vm5, %v3449_v17, %v3203_v45  ;;  %v1137_v45 = vsel %vm1130_vm9, %v3247_v35, %v3007_v23  ;;  %v1206_v23 = vld [vmem:[%s4070_s7] sm:$0xff]  ;;  %v1113_v35 = vmul.f32 %v1101_v25, %v1094_v22  ;;  %v1175_v39 = vsel %vm1174_vm14, %v3169_v3, %v1171_v54 }
 0x268   :  { %1326 = vmatpush.msrb.mxu1 %v980_v62  ;;  %v890_v2 = vmul.f32 %v878_v50, %v875_v30  ;;  %1210 = vperm.xlu2 %2215, %v1206_v23   ;;  %v1181_v63 = vsel %vm1174_vm14, %v1171_v54, %v3070_v55  ;;  %v4135_v62 = vld [vmem:[#allocation27_spill] sm:$0xff]  ;;  %v1049_v54 = vsel %vm1042_vm13, %v3341_v16, %v4136_v4  ;;  %v4148_v4 = vld [vmem:[#allocation34_spill] sm:$0xff] }
 0x269   :  { %1237 = vmatpush.msra.mxu0 %v930_v58  ;;  %v1050_v55 = vsel %vm1042_vm13, %v3375_v56, %v4135_v62  ;;  %v1196_v48 = vmul.f32 %v1188_v29, %v1175_v39  ;;  %v1197_v30 = vmul.f32 %v1189_v24, %v1181_v63  ;;  %v1013_v56 = vperm.slane %v3281_v28, 3  ;;  %v4137_v16 = vld [vmem:[#allocation35_spill] sm:$0xff]  ;;  %v4143_v39 = vld [vmem:[#allocation12_spill] sm:$0xff] }
 0x26a   :  { %1327 = vmatpush.msrb.mxu1 %v976_v18  ;;  %v880_v18 = vperm.slane %v3350_v52, 2  ;;  %v912_v28 = vsel %vm910_vm1, %v3408_v61, %v3410_v13  ;;  %v955_v13 = vsel %vm954_vm15, %v3432_v60, %v3287_v14  ;;  %v4144_v14 = vld [vmem:[#allocation21_spill] sm:$0xff]  ;;  %v4147_v62 = vld [vmem:[#allocation24_spill] sm:$0xff] }
 0x26b   :  { %1238 = vmatpush.msra.mxu0 %v890_v2  ;;  %v903_v42 = vpop.permute.xlu1 %902  ;;  %v969_v2 = vperm.slane %v3299_v26, 3  ;;  %v4139_v26 = vld [vmem:[#allocation29_spill] sm:$0xff]  ;;  %v1025_v61 = vmul.f32 %v1013_v56, %v3397_v36 }
 0x26c   :  { %1328 = vmatpush.msrb.mxu1 %v936_v33  ;;  %v3475_v12 = vsel %vm910_vm1, %v903_v42, %v3274_v43  ;;  %v913_v11 = vsel %vm910_vm1, %v3058_v0, %v903_v42  ;;  %v1057_v43 = vperm.slane %v3134_v37, 3  ;;  %v1153_v0 = vmul.f32 %v1145_v32, %v1137_v45  ;;  %v4138_v45 = vld [vmem:[#allocation32_spill] sm:$0xff]  ;;  %v4142_v36 = vld [vmem:[#allocation25_spill] sm:$0xff] }
 0x26d   :  { %v932_v40 = vmul.f32 %v924_v51, %v913_v11  ;;  %1239 = vmatpush.msra.mxu0 %v886_v9  ;;  %v956_v32 = vsel %vm954_vm15, %v4137_v16, %v3373_v31  ;;  %v925_v9 = vperm.slane %v3324_v34, 3  ;;  %v4140_v11 = vld [vmem:[#allocation28_spill] sm:$0xff] }
 0x26e   :  { %1240 = vmatmul.f32.vlgmr.msra.gmra.mxu0 %v3377_v59  ;;  %v125_v21 = vpop.permute.xlu2 %124  ;;  %v1173_v7 = vpop.permute.xlu0 %1172  ;;  %v1069_v6 = vmul.f32 %v1057_v43, %v1050_v55  ;;  %v1065_v33 = vmul.f32 %v1057_v43, %v1049_v54  ;;  %v981_v23 = vmul.f32 %v969_v2, %v956_v32 }
 0x26f   :  { %1362 = vmatpush.msrb.mxu0 %v1157_v41  ;;  %1329 = vmatpush.msrb.mxu1 %v932_v40  ;;  %v3493_v20 = vadd.f32 %v2659_v46, %v125_v21  ;;  %v3496_v47 = vadd.f32 %v2858_v57, %v125_v21  ;;  %v3499_v37 = vadd.f32 %v2892_v44, %v125_v21  ;;  %v4134_v57 = vld [vmem:[#allocation30_spill] sm:$0xff]  ;;  %v4141_v41 = vld [vmem:[#allocation33_spill] sm:$0xff] }
 0x270   :  { %v3502_v49 = vadd.f32 %v2919_v10, %v125_v21  ;;  %v1176_v46 = vsel %vm1174_vm14, %v4133_v38, %v1173_v7  ;;  %v1182_v44 = vsel %vm1174_vm14, %v1173_v7, %v4134_v57  ;;  %v1021_v40 = vmul.f32 %v1013_v56, %v4141_v41  ;;  %v4145_v38 = vld [vmem:[#allocation22_spill] sm:$0xff] }
 0x271   :  { %1363 = vmatpush.msrb.mxu0 %v1153_v0  ;;  %v2116_v10 = vmul.f32 -1.442695, %v3493_v20  ;;  %v2117_v53 = vmul.f32 -1.442695, %v3496_v47  ;;  %v2118_v15 = vmul.f32 -1.442695, %v3499_v37  ;;  %v1200_v3 = vmul.f32 %v1188_v29, %v1176_v46 }
 0x272   :  { %v2119_v51 = vmul.f32 -1.442695, %v3502_v49  ;;  %v1201_v58 = vmul.f32 %v1189_v24, %v1182_v44  ;;  %v3560_v43 = vmul.f32 %v925_v9, %v912_v28  ;;  %v977_v44 = vmul.f32 %v969_v2, %v955_v13 }
 0x273   :  { %1364 = vmatpush.msrb.mxu0 %v1113_v35  ;;  %v3524_v50 = vpop.permute.xlu1 %857  ;;  %2280 = vpow2.f32 %v2116_v10  ;;  %1353 = vmatpush.msra.mxu3 %v1200_v3  ;;  %v881_v35 = vperm.slane %v3350_v52, 3  ;;  %v4146_v10 = vld [vmem:[#allocation23_spill] sm:$0xff]  ;;  %v933_v1 = vmul.f32 %v925_v9, %v3475_v12 }
 0x274   :  { %2282 = vpow2.f32 %v2117_v53  ;;  %1399 = vmatpush.msrb.mxu2 %v1201_v58  ;;  %v870_v34 = vsel %vm867_vm5, %v4140_v11, %v3524_v50 }
 0x275   :  { %1365 = vmatpush.msrb.mxu0 %v1109_v5  ;;  %2284 = vpow2.f32 %v2118_v15  ;;  %1354 = vmatpush.msra.mxu3 %v1196_v48  ;;  %v888_v29 = vmul.f32 %v880_v18, %v870_v34 }
 0x276   :  { %1243 = vmatmul.f32.gmra.mxu0 %v3412_v27  ;;  %2286 = vpow2.f32 %v2119_v51  ;;  %1400 = vmatpush.msrb.mxu2 %v1197_v30  ;;  %v860_v42 = vpop.permute.xlu0 %859  ;;  %v868_v51 = vsel %vm867_vm5, %v3524_v50, %v3339_v8  ;;  %v1582_v50 = vld [vmem:[%s4072_s9 + $0x10] sm:$0xff]  ;;  %s2527_s9 = smov [#allocation8]  }
 0x277   :  { %2147 = vmatmul.msk.f32.vlgmr.msra.gmra.mxu3 %vm590_vm10, %v4138_v45  ;;  %v871_v22 = vsel %vm867_vm5, %v4139_v26, %v860_v42  ;;  %1366 = vmatpush.msrb.mxu0 %v1069_v6  ;;  %v869_v55 = vsel %vm867_vm5, %v860_v42, %v3449_v17  ;;  %v3613_v56 = vmul.f32 %v881_v35, %v868_v51  ;;  %s2072_s20 = sshll.u32 %s2527_s9, 4  ;;  %s2073_s20 = int_to_ptr.vmem [resolvable:$true] %s2072_s20 }
 0x278   :  { %2149 = vmatmul.msk.f32.vlgmr.msrb.gmra.mxu2 %vm590_vm10, %v4138_v45  ;;  %v892_v31 = vmul.f32 %v880_v18, %v871_v22  ;;  %v893_v18 = vmul.f32 %v881_v35, %v869_v55  ;;  %1596 = vperm.xlu2 %2215, %v1582_v50  }
 0x279   :  { %v2281_v25 = vpop.eup %2280  ;;  %1367 = vmatpush.msrb.mxu0 %v1065_v33 }
 0x27a   :  { %v2283_v19 = vpop.eup %2282  ;;  %v3562_v0 = vadd.f32 1.0, %v2281_v25  ;;  %1330 = vmatpush.msrb.mxu1 %v892_v31 }
 0x27b   :  { %v120_v24 = vpop.permute.xlu1 %119  ;;  %v2285_v21 = vpop.eup %2284  ;;  %v3565_v7 = vadd.f32 1.0, %v2283_v19  ;;  %1368 = vmatpush.msrb.mxu0 %v4142_v36 }
 0x27c   :  { %v3569_v63 = vadd.f32 %v4143_v39, %v120_v24  ;;  %v3572_v60 = vadd.f32 %v4144_v14, %v120_v24  ;;  %v3575_v46 = vadd.f32 %v4145_v38, %v120_v24  ;;  %v2287_v57 = vpop.eup %2286  ;;  %v3577_v52 = vadd.f32 1.0, %v2285_v21  ;;  %1331 = vmatpush.msrb.mxu1 %v888_v29 }
 0x27d   :  { %2288 = vrcp.f32 %v3562_v0  ;;  %v3581_v53 = vadd.f32 %v4146_v10, %v120_v24  ;;  %v3583_v15 = vadd.f32 1.0, %v2287_v57  ;;  %1332 = vmatmul.f32.vlgmr.msrb.gmra.mxu1 %v3377_v59  ;;  %1369 = vmatpush.msrb.mxu0 %v4147_v62  ;;  %v509_v48 = vand.u32 2147483647, %v3562_v0 }
 0x27e   :  { %2290 = vrcp.f32 %v3565_v7  ;;  %v2112_v3 = vmul.f32 -1.442695, %v3569_v63  ;;  %v2113_v5 = vmul.f32 -1.442695, %v3572_v60  ;;  %v2114_v58 = vmul.f32 -1.442695, %v3575_v46 }
 0x27f   :  { %2292 = vrcp.f32 %v3577_v52  ;;  %2148 = vmatmul.msk.f32.gmra.mxu3 %vm590_vm10, %v4148_v4  ;;  %v2115_v54 = vmul.f32 -1.442695, %v3581_v53  ;;  %1370 = vmatpush.msrb.mxu0 %v1025_v61  ;;  %v511_v30 = vand.u32 2147483648, %v3562_v0  ;;  %v524_v8 = vand.u32 2147483647, %v3565_v7 }
 0x280   :  { %2294 = vrcp.f32 %v3583_v15  ;;  %2150 = vmatmul.msk.f32.gmra.mxu2 %vm590_vm10, %v4148_v4  ;;  %v526_v17 = vand.u32 2147483648, %v3565_v7  ;;  %v539_v2 = vand.u32 2147483647, %v3577_v52  ;;  %vm505_vm10 = vweird.f32 %v3562_v0 }
 0x281   :  { %2296 = vpow2.f32 %v2112_v3  ;;  %1371 = vmatpush.msrb.mxu0 %v1021_v40  ;;  %vm520_vm4 = vweird.f32 %v3565_v7  ;;  %v541_v12 = vand.u32 2147483648, %v3577_v52  ;;  %vm3622_vm2 = vcmp.eq.f32.partialorder %v509_v48, 8.507059e+37 }
 0x282   :  { %2298 = vpow2.f32 %v2113_v5  ;;  %v512_v9 = vor.u32 1.1754944e-38, %v511_v30  ;;  %vm535_vm3 = vweird.f32 %v3577_v52  ;;  %vm3629_vm7 = vcmp.eq.f32.partialorder %v524_v8, 8.507059e+37 }
 0x283   :  { %v2289_v6 = vpop.eup %2288  ;;  %2300 = vpow2.f32 %v2114_v58  ;;  %1372 = vmatpush.msrb.mxu0 %v981_v23  ;;  %v527_v26 = vor.u32 1.1754944e-38, %v526_v17  ;;  %vm550_vm8 = vweird.f32 %v3583_v15  ;;  %vm3637_vm11 = vcmp.eq.f32.partialorder %v539_v2, 8.507059e+37 }
 0x284   :  { %v3619_v33 = vpop.eup %2290  ;;  %2302 = vpow2.f32 %v2115_v54  ;;  %v501_v16 = vmul.f32 %v2289_v6, %v3562_v0  ;;  %vm506_vm6 = vweird.f32 %v2289_v6  ;;  %v542_v25 = vor.u32 1.1754944e-38, %v541_v12 }
 0x285   :  { %v2293_v42 = vpop.eup %2292  ;;  %v516_v45 = vmul.f32 %v3619_v33, %v3565_v7  ;;  %1335 = vmatmul.f32.gmra.mxu1 %v3412_v27  ;;  %1373 = vmatpush.msrb.mxu0 %v977_v44  ;;  %vm521_vm9 = vweird.f32 %v3619_v33  ;;  %v554_v61 = vand.u32 2147483647, %v3583_v15  ;;  %v556_v24 = vand.u32 2147483648, %v3583_v15  ;;  %vm507_vm14 = vmor %vm505_vm10, %vm506_vm6 }
 0x286   :  { %v2295_v22 = vpop.eup %2294  ;;  %v502_v11 = vsub.f32 1.0, %v501_v16  ;;  %v531_v34 = vmul.f32 %v2293_v42, %v3577_v52  ;;  %vm536_vm12 = vweird.f32 %v2293_v42  ;;  %vm522_vm15 = vmor %vm520_vm4, %vm521_vm9 }
 0x287   :  { %v2297_v41 = vpop.eup %2296  ;;  %v517_v40 = vsub.f32 1.0, %v516_v45  ;;  %v546_v23 = vmul.f32 %v2295_v22, %v3583_v15  ;;  %1374 = vmatpush.msrb.mxu0 %v3560_v43  ;;  %vm551_vm13 = vweird.f32 %v2295_v22  ;;  %v557_v51 = vor.u32 1.1754944e-38, %v556_v24  ;;  %vm537_vm1 = vmor %vm535_vm3, %vm536_vm12 }
 0x288   :  { %v2299_v13 = vpop.eup %2298  ;;  %v3643_v19 = vadd.f32 1.0, %v2297_v41  ;;  %v503_v35 = vmul.f32 %v2289_v6, %v502_v11  ;;  %v532_v29 = vsub.f32 1.0, %v531_v34  ;;  %vm552_vm5 = vmor %vm550_vm8, %vm551_vm13  ;;  %vm555_vm10 = vcmp.eq.f32.partialorder %v554_v61, 8.507059e+37 }
 0x289   :  { %v2301_v21 = vpop.eup %2300  ;;  %v3647_v36 = vadd.f32 1.0, %v2299_v13  ;;  %v518_v39 = vmul.f32 %v3619_v33, %v517_v40  ;;  %v547_v14 = vsub.f32 1.0, %v546_v23  ;;  %1375 = vmatpush.msrb.mxu0 %v933_v1 }
 0x28a   :  { %v2303_v38 = vpop.eup %2302  ;;  %v3650_v57 = vadd.f32 1.0, %v2301_v21  ;;  %2304 = vrcp.f32 %v3643_v19  ;;  %v504_v44 = vadd.f32 %v2289_v6, %v503_v35  ;;  %v533_v10 = vmul.f32 %v2293_v42, %v532_v29 }
 0x28b   :  { %v3653_v43 = vadd.f32 1.0, %v2303_v38  ;;  %2306 = vrcp.f32 %v3647_v36  ;;  %v519_v3 = vadd.f32 %v3619_v33, %v518_v39  ;;  %v548_v5 = vmul.f32 %v2295_v22, %v547_v14  ;;  %1376 = vmatpush.msrb.mxu0 %v893_v18 }
 0x28c   :  { %2308 = vrcp.f32 %v3650_v57  ;;  %v508_v62 = vsel %vm507_vm14, %v2289_v6, %v504_v44  ;;  %v534_v55 = vadd.f32 %v2293_v42, %v533_v10  ;;  %v449_v30 = vand.u32 2147483647, %v3643_v19 }
 0x28d   :  { %2310 = vrcp.f32 %v3653_v43  ;;  %v513_v0 = vsel %vm3622_vm2, %v512_v9, %v508_v62  ;;  %v523_v58 = vsel %vm522_vm15, %v3619_v33, %v519_v3  ;;  %v549_v4 = vadd.f32 %v2295_v22, %v548_v5  ;;  %1377 = vmatpush.msrb.mxu0 %v3613_v56 }
 0x28e   :  { %v572_v54 = vmul.f32 %v513_v0, %v3493_v20  ;;  %v528_v7 = vsel %vm3629_vm7, %v527_v26, %v523_v58  ;;  %v538_v48 = vsel %vm537_vm1, %v2293_v42, %v534_v55  ;;  %1378 = vmatmul.f32.vlgmr.msrb.gmra.mxu0 %v3377_v59  ;;  %v451_v18 = vand.u32 2147483648, %v3643_v19 }
 0x28f   :  { %v573_v1 = vmul.f32 %v528_v7, %v3496_v47  ;;  %v543_v52 = vsel %vm3637_vm11, %v542_v25, %v538_v48  ;;  %v553_v8 = vsel %vm552_vm5, %v2295_v22, %v549_v4  ;;  %vm445_vm4 = vweird.f32 %v3643_v19 }
 0x290   :  { %v2305_v20 = vpop.eup %2304  ;;  %1628 = vmatpush.msrb.mxu3 %v572_v54  ;;  %v574_v17 = vmul.f32 %v543_v52, %v3499_v37  ;;  %v558_v50 = vsel %vm555_vm10, %v557_v51, %v553_v8  ;;  %vm3689_vm2 = vcmp.eq.f32.partialorder %v449_v30, 8.507059e+37  ;;  %vm460_vm3 = vweird.f32 %v3647_v36  ;;  %v3740_v54 = vpop.permute.xlu0 %1215 }
 0x291   :  { %v2307_v15 = vpop.eup %2306  ;;  %1657 = vmatpush.msra.mxu1 %v573_v1  ;;  %v575_v56 = vmul.f32 %v558_v50, %v3502_v49  ;;  %v441_v47 = vmul.f32 %v2305_v20, %v3643_v19  ;;  %v464_v37 = vand.u32 2147483647, %v3647_v36  ;;  %vm446_vm6 = vweird.f32 %v2305_v20 }
 0x292   :  { %v2309_v2 = vpop.eup %2308  ;;  %1686 = vmatpush.msra.mxu2 %v574_v17  ;;  %v456_v6 = vmul.f32 %v2307_v15, %v3647_v36  ;;  %v466_v49 = vand.u32 2147483648, %v3647_v36  ;;  %v452_v32 = vor.u32 1.1754944e-38, %v451_v18  ;;  %vm461_vm7 = vweird.f32 %v2307_v15  ;;  %vm447_vm12 = vmor %vm445_vm4, %vm446_vm6 }
 0x293   :  { %v2311_v12 = vpop.eup %2310  ;;  %1715 = vmatpush.msra.mxu0 %v575_v56  ;;  %v442_v33 = vsub.f32 1.0, %v441_v47  ;;  %v471_v16 = vmul.f32 %v2309_v2, %v3650_v57  ;;  %v479_v42 = vand.u32 2147483647, %v3650_v57  ;;  %vm475_vm8 = vweird.f32 %v3650_v57  ;;  %vm462_vm15 = vmor %vm460_vm3, %vm461_vm7 }
 0x294   :  { %v457_v9 = vsub.f32 1.0, %v456_v6  ;;  %v486_v26 = vmul.f32 %v2311_v12, %v3653_v43  ;;  %vm3701_vm9 = vcmp.eq.f32.partialorder %v464_v37, 8.507059e+37  ;;  %vm476_vm11 = vweird.f32 %v2309_v2 }
 0x295   :  { %v443_v45 = vmul.f32 %v2305_v20, %v442_v33  ;;  %v472_v28 = vsub.f32 1.0, %v471_v16  ;;  %v481_v34 = vand.u32 2147483648, %v3650_v57  ;;  %v467_v25 = vor.u32 1.1754944e-38, %v466_v49  ;;  %vm477_vm1 = vmor %vm475_vm8, %vm476_vm11 }
 0x296   :  { %v458_v22 = vmul.f32 %v2307_v15, %v457_v9  ;;  %1381 = vmatmul.f32.gmra.mxu0 %v3412_v27  ;;  %v487_v40 = vsub.f32 1.0, %v486_v26  ;;  %vm3710_vm13 = vcmp.eq.f32.partialorder %v479_v42, 8.507059e+37  ;;  %vm491_vm14 = vweird.f32 %v2311_v12 }
 0x297   :  { %v444_v31 = vadd.f32 %v2305_v20, %v443_v45  ;;  %v473_v41 = vmul.f32 %v2309_v2, %v472_v28  ;;  %v496_v13 = vand.u32 2147483648, %v3653_v43  ;;  %v494_v24 = vand.u32 2147483647, %v3653_v43 }
 0x298   :  { %v459_v23 = vadd.f32 %v2307_v15, %v458_v22  ;;  %v488_v29 = vmul.f32 %v2311_v12, %v487_v40  ;;  %v482_v39 = vor.u32 1.1754944e-38, %v481_v34  ;;  %vm490_vm5 = vweird.f32 %v3653_v43  ;;  %v3799_v34 = vld [vmem:[#allocation7 + $0x8] sm:$0xff] }
 0x299   :  { %v448_v35 = vsel %vm447_vm12, %v2305_v20, %v444_v31  ;;  %v474_v27 = vadd.f32 %v2309_v2, %v473_v41  ;;  %vm492_vm10 = vmor %vm490_vm5, %vm491_vm14  ;;  %v497_v5 = vor.u32 1.1754944e-38, %v496_v13  ;;  %vm495_vm4 = vcmp.eq.f32.partialorder %v494_v24, 8.507059e+37 }
 0x29a   :  { %v453_v19 = vsel %vm3689_vm2, %v452_v32, %v448_v35  ;;  %v463_v21 = vsel %vm462_vm15, %v2307_v15, %v459_v23  ;;  %v489_v44 = vadd.f32 %v2311_v12, %v488_v29 }
 0x29b   :  { %v568_v14 = vmul.f32 %v453_v19, %v3569_v63  ;;  %v468_v36 = vsel %vm3701_vm9, %v467_v25, %v463_v21  ;;  %v478_v38 = vsel %vm477_vm1, %v2309_v2, %v474_v27 }
 0x29c   :  { %v569_v10 = vmul.f32 %v468_v36, %v3572_v60  ;;  %v483_v3 = vsel %vm3710_vm13, %v482_v39, %v478_v38  ;;  %v493_v62 = vsel %vm492_vm10, %v2311_v12, %v489_v44 }
 0x29d   :  { %1629 = vmatpush.msrb.mxu3 %v568_v14  ;;  %v570_v57 = vmul.f32 %v483_v3, %v3575_v46  ;;  %v498_v63 = vsel %vm495_vm4, %v497_v5, %v493_v62 }
 0x29e   :  { %1658 = vmatpush.msra.mxu1 %v569_v10  ;;  %v571_v43 = vmul.f32 %v498_v63, %v3581_v53 }
 0x29f   :  { %1687 = vmatpush.msra.mxu2 %v570_v57 }
 0x2a0   :  { %1716 = vmatpush.msra.mxu0 %v571_v43 }
 0x2a8   :  { %v1264_v30 = vpop.f32.mrf.mxu1 }
 0x2b0   :  { %v1310_v60 = vpop.f32.mrf.mxu3 }
 0x2b8   :  { %v1267_v15 = vpop.f32.mrf.mxu1 }
 0x2be   :  { %v1313_v7 = vpop.f32.mrf.mxu3 }
 0x2c2   :  { %v3734_v55 = vpop.permute.xlu2 %1210 }
 0x2dc   :  { %v1287_v51 = vpop.f32.mrf.mxu2 }
 0x2dd   :  { %v1288_v0 = vadd.f32 %v1287_v51, %v3734_v55 }
 0x2df   :  { %v3737_v58 = vadd.f32 %v1310_v60, %v1288_v0 }
 0x2e1   :  { %v2152_v4 = vmul.f32 -1.442695, %v3737_v58 }
 0x2e3   :  { %2312 = vpow2.f32 %v2152_v4 }
 0x2e4   :  { %v1290_v46 = vpop.f32.mrf.mxu2 }
 0x2e5   :  { %v1291_v48 = vadd.f32 %v1290_v46, %v3740_v54  ;;  %v4163_v46 = vld [vmem:[#allocation15_spill] sm:$0xff] }
 0x2e7   :  { %v3743_v53 = vadd.f32 %v1313_v7, %v1291_v48 }
 0x2e9   :  { %v2313_v1 = vpop.eup %2312  ;;  %v2156_v52 = vmul.f32 -1.442695, %v3743_v53 }
 0x2ea   :  { %v1433_v8 = vadd.f32 1.0, %v2313_v1  ;;  %v4164_v1 = vld [vmem:[#allocation16_spill] sm:$0xff] }
 0x2eb   :  { %v1241_v20 = vpop.f32.mrf.mxu0  ;;  %2314 = vpow2.f32 %v2156_v52 }
 0x2ec   :  { %v1242_v17 = vadd.f32 %v1241_v20, %v3734_v55  ;;  %2316 = vrcp.f32 %v1433_v8  ;;  %vm1460_vm2 = vweird.f32 %v1433_v8  ;;  %v1466_v42 = vand.u32 2147483648, %v1433_v8 }
 0x2ed   :  { %v1464_v22 = vand.u32 2147483647, %v1433_v8 }
 0x2ee   :  { %v3747_v50 = vadd.f32 %v1264_v30, %v1242_v17  ;;  %v1467_v41 = vor.u32 1.1754944e-38, %v1466_v42 }
 0x2ef   :  { %vm1465_vm7 = vcmp.eq.f32.partialorder %v1464_v22, 8.507059e+37 }
 0x2f0   :  { %v2151_v18 = vmul.f32 -1.442695, %v3747_v50 }
 0x2f1   :  { %v2315_v56 = vpop.eup %2314 }
 0x2f2   :  { %2318 = vpow2.f32 %v2151_v18  ;;  %v2317_v47 = vpop.eup %2316  ;;  %v1437_v2 = vadd.f32 1.0, %v2315_v56 }
 0x2f3   :  { %v1244_v59 = vpop.f32.mrf.mxu0  ;;  %v1456_v6 = vmul.f32 %v2317_v47, %v1433_v8  ;;  %vm1461_vm3 = vweird.f32 %v2317_v47 }
 0x2f4   :  { %v1245_v37 = vadd.f32 %v1244_v59, %v3740_v54  ;;  %2320 = vrcp.f32 %v1437_v2  ;;  %vm3757_vm6 = vmor %vm1460_vm2, %vm1461_vm3  ;;  %v1526_v13 = vand.u32 2147483648, %v1437_v2  ;;  %v1524_v29 = vand.u32 2147483647, %v1437_v2 }
 0x2f5   :  { %v1457_v12 = vsub.f32 1.0, %v1456_v6  ;;  %vm1520_vm9 = vweird.f32 %v1437_v2 }
 0x2f6   :  { %v3751_v33 = vadd.f32 %v1267_v15, %v1245_v37  ;;  %v1527_v38 = vor.u32 1.1754944e-38, %v1526_v13  ;;  %vm1525_vm12 = vcmp.eq.f32.partialorder %v1524_v29, 8.507059e+37  ;;  %v4167_v29 = vld [vmem:[#allocation13_spill] sm:$0xff] }
 0x2f7   :  { %v1458_v16 = vmul.f32 %v2317_v47, %v1457_v12 }
 0x2f8   :  { %v2319_v49 = vpop.eup %2318  ;;  %v2155_v32 = vmul.f32 -1.442695, %v3751_v33 }
 0x2f9   :  { %v3754_v9 = vadd.f32 1.0, %v2319_v49  ;;  %v1459_v26 = vadd.f32 %v2317_v47, %v1458_v16 }
 0x2fa   :  { %2322 = vpow2.f32 %v2155_v32  ;;  %v1356_v45 = vpop.f32.mrf.mxu3  ;;  %v2321_v28 = vpop.eup %2320 }
 0x2fb   :  { %2324 = vrcp.f32 %v3754_v9  ;;  %v1333_v11 = vpop.f32.mrf.mxu1  ;;  %v1516_v31 = vmul.f32 %v2321_v28, %v1437_v2  ;;  %v1463_v61 = vsel %vm3757_vm6, %v2317_v47, %v1459_v26  ;;  %vm1521_vm8 = vweird.f32 %v2321_v28  ;;  %v1402_v20 = vpop.f32.mrf.mxu2 }
 0x2fc   :  { %v1334_v25 = vadd.f32 %v1333_v11, %v3734_v55  ;;  %v1468_v39 = vsel %vm1465_vm7, %v1467_v41, %v1463_v61  ;;  %vm1522_vm11 = vmor %vm1520_vm9, %vm1521_vm8  ;;  %vm1445_vm13 = vweird.f32 %v3754_v9  ;;  %v1451_v17 = vand.u32 2147483648, %v3754_v9 }
 0x2fd   :  { %v1517_v40 = vsub.f32 1.0, %v1516_v31  ;;  %v1561_v62 = vmul.f32 %v1468_v39, %v3737_v58  ;;  %v1449_v18 = vand.u32 2147483647, %v3754_v9 }
 0x2fe   :  { %v3762_v23 = vadd.f32 %v1356_v45, %v1334_v25  ;;  %v1452_v49 = vor.u32 1.1754944e-38, %v1451_v17 }
 0x2ff   :  { %v1518_v27 = vmul.f32 %v2321_v28, %v1517_v40  ;;  %v1569_v52 = vadd.f32 %v1561_v62, %v4164_v1  ;;  %vm1450_vm5 = vcmp.eq.f32.partialorder %v1449_v18, 8.507059e+37 }
 0x300   :  { %v2323_v35 = vpop.eup %2322  ;;  %v2153_v24 = vmul.f32 -1.442695, %v3762_v23 }
 0x301   :  { %v2325_v19 = vpop.eup %2324  ;;  %v1436_v21 = vadd.f32 1.0, %v2323_v35  ;;  %v1519_v14 = vadd.f32 %v2321_v28, %v1518_v27 }
 0x302   :  { %v1441_v36 = vmul.f32 %v2325_v19, %v3754_v9  ;;  %2326 = vpow2.f32 %v2153_v24  ;;  %v1359_v10 = vpop.f32.mrf.mxu3  ;;  %vm1446_vm14 = vweird.f32 %v2325_v19 }
 0x303   :  { %2328 = vrcp.f32 %v1436_v21  ;;  %v1336_v44 = vpop.f32.mrf.mxu1  ;;  %v1523_v3 = vsel %vm1522_vm11, %v2321_v28, %v1519_v14  ;;  %vm3786_vm15 = vmor %vm1445_vm13, %vm1446_vm14  ;;  %v1511_v2 = vand.u32 2147483648, %v1436_v21  ;;  %v1509_v12 = vand.u32 2147483647, %v1436_v21  ;;  %v1405_v13 = vpop.f32.mrf.mxu2 }
 0x304   :  { %v1442_v5 = vsub.f32 1.0, %v1441_v36  ;;  %v1337_v57 = vadd.f32 %v1336_v44, %v3740_v54  ;;  %v1528_v63 = vsel %vm1525_vm12, %v1527_v38, %v1523_v3  ;;  %vm1505_vm10 = vweird.f32 %v1436_v21 }
 0x305   :  { %v1565_v43 = vmul.f32 %v1528_v63, %v3743_v53  ;;  %v3779_v53 = vld [vmem:[#allocation7] sm:$0xff]  ;;  %v1512_v28 = vor.u32 1.1754944e-38, %v1511_v2  ;;  %vm1510_vm2 = vcmp.eq.f32.partialorder %v1509_v12, 8.507059e+37 }
 0x306   :  { %v1443_v60 = vmul.f32 %v2325_v19, %v1442_v5  ;;  %v3771_v51 = vadd.f32 %v1359_v10, %v1337_v57  ;;  %v3814_v10 = vld [vmem:[#allocation7 + $0x10] sm:$0xff] }
 0x307   :  { %v1573_v7 = vadd.f32 %v1565_v43, %v4163_v46 }
 0x308   :  { %v2327_v0 = vpop.eup %2326  ;;  %v2157_v4 = vmul.f32 -1.442695, %v3771_v51  ;;  %v1444_v8 = vadd.f32 %v2325_v19, %v1443_v60 }
 0x309   :  { %v2329_v48 = vpop.eup %2328  ;;  %v3776_v30 = vadd.f32 1.0, %v2327_v0  ;;  %1659 = vmatpush.msra.mxu1 %v1573_v7 }
 0x30a   :  { %v1501_v58 = vmul.f32 %v2329_v48, %v1436_v21  ;;  %2330 = vpow2.f32 %v2157_v4  ;;  %v1448_v6 = vsel %vm3786_vm15, %v2325_v19, %v1444_v8  ;;  %vm1506_vm1 = vweird.f32 %v2329_v48 }
 0x30b   :  { %2332 = vrcp.f32 %v3776_v30  ;;  %1660 = vmatpush.msra.mxu1 %v1569_v52  ;;  %v1379_v56 = vpop.f32.mrf.mxu0  ;;  %v1453_v45 = vsel %vm1450_vm5, %v1452_v49, %v1448_v6  ;;  %vm1507_vm4 = vmor %vm1505_vm10, %vm1506_vm1  ;;  %vm1475_vm3 = vweird.f32 %v3776_v30  ;;  %v1479_v39 = vand.u32 2147483647, %v3776_v30  ;;  %v1579_v52 = vld [vmem:[#allocation7 + $0x18] sm:$0xff] }
 0x30c   :  { %v1502_v15 = vsub.f32 1.0, %v1501_v58  ;;  %2163 = vmatmul.msk.f32.vlgmr.msra.gmra.mxu1 %vm127_vm0, %v3779_v53  ;;  %v1380_v59 = vadd.f32 %v1379_v56, %v3734_v55  ;;  %v1560_v25 = vmul.f32 %v1453_v45, %v3747_v50  ;;  %v4168_v50 = vld [vmem:[#allocation14_spill] sm:$0xff]  ;;  %v1481_v14 = vand.u32 2147483648, %v3776_v30  ;;  %v4171_v56 = vld [vmem:[#allocation17_spill] sm:$0xff] }
 0x30d   :  { %vm1480_vm8 = vcmp.eq.f32.partialorder %v1479_v39, 8.507059e+37 }
 0x30e   :  { %v1503_v37 = vmul.f32 %v2329_v48, %v1502_v15  ;;  %v3795_v16 = vadd.f32 %v1402_v20, %v1380_v59  ;;  %v1482_v62 = vor.u32 1.1754944e-38, %v1481_v14  ;;  %v4172_v59 = vld [vmem:[#allocation18_spill] sm:$0xff]  ;;  %v3863_v14 = vpop.permute.xlu2 %1596 }
 0x310   :  { %v2331_v32 = vpop.eup %2330  ;;  %v1504_v9 = vadd.f32 %v2329_v48, %v1503_v37  ;;  %v2154_v55 = vmul.f32 -1.442695, %v3795_v16 }
 0x311   :  { %v2333_v42 = vpop.eup %2332  ;;  %v1438_v26 = vadd.f32 1.0, %v2331_v32 }
 0x312   :  { %v1508_v22 = vsel %vm1507_vm4, %v2329_v48, %v1504_v9  ;;  %v1471_v11 = vmul.f32 %v2333_v42, %v3776_v30  ;;  %vm1476_vm6 = vweird.f32 %v2333_v42 }
 0x313   :  { %v1513_v31 = vsel %vm1510_vm2, %v1512_v28, %v1508_v22  ;;  %2334 = vrcp.f32 %v1438_v26  ;;  %v1382_v61 = vpop.f32.mrf.mxu0  ;;  %vm3816_vm7 = vmor %vm1475_vm3, %vm1476_vm6  ;;  %v1541_v63 = vand.u32 2147483648, %v1438_v26  ;;  %v1539_v0 = vand.u32 2147483647, %v1438_v26 }
 0x314   :  { %v1564_v41 = vmul.f32 %v1513_v31, %v3751_v33  ;;  %v1472_v40 = vsub.f32 1.0, %v1471_v11  ;;  %2336 = vpow2.f32 %v2154_v55  ;;  %2164 = vmatmul.msk.f32.gmra.mxu1 %vm127_vm0, %v3799_v34  ;;  %v1383_v35 = vadd.f32 %v1382_v61, %v3740_v54  ;;  %v4173_v61 = vld [vmem:[#allocation19_spill] sm:$0xff] }
 0x315   :  { %v1568_v33 = vadd.f32 %v1560_v25, %v4168_v50  ;;  %vm1535_vm11 = vweird.f32 %v1438_v26  ;;  %v1542_v48 = vor.u32 1.1754944e-38, %v1541_v63  ;;  %vm1540_vm13 = vcmp.eq.f32.partialorder %v1539_v0, 8.507059e+37  ;;  %v3857_v50 = vpop.permute.xlu1 %1591 }
 0x316   :  { %v1473_v27 = vmul.f32 %v2333_v42, %v1472_v40  ;;  %v1572_v24 = vadd.f32 %v1564_v41, %v4167_v29  ;;  %v3807_v19 = vadd.f32 %v1405_v13, %v1383_v35  ;;  %v4174_v35 = vld [vmem:[#allocation20_spill] sm:$0xff] }
 0x318   :  { %1630 = vmatpush.msrb.mxu3 %v1572_v24  ;;  %v2158_v36 = vmul.f32 -1.442695, %v3807_v19  ;;  %v1474_v54 = vadd.f32 %v2333_v42, %v1473_v27 }
 0x319   :  { %v2335_v21 = vpop.eup %2334 }
 0x31a   :  { %v2337_v38 = vpop.eup %2336  ;;  %v1531_v44 = vmul.f32 %v2335_v21, %v1438_v26  ;;  %1631 = vmatpush.msrb.mxu3 %v1568_v33  ;;  %2338 = vpow2.f32 %v2158_v36  ;;  %v1478_v43 = vsel %vm3816_vm7, %v2333_v42, %v1474_v54  ;;  %vm1536_vm9 = vweird.f32 %v2335_v21 }
 0x31b   :  { %v1435_v5 = vadd.f32 1.0, %v2337_v38  ;;  %2159 = vmatmul.msk.f32.vlgmr.msrb.gmra.mxu3 %vm127_vm0, %v3779_v53  ;;  %v1483_v7 = vsel %vm1480_vm8, %v1482_v62, %v1478_v43  ;;  %vm1537_vm12 = vmor %vm1535_vm11, %vm1536_vm9 }
 0x31c   :  { %v1532_v57 = vsub.f32 1.0, %v1531_v44  ;;  %2165 = vmatmul.msk.f32.gmra.mxu1 %vm127_vm0, %v3814_v10  ;;  %v1562_v20 = vmul.f32 %v1483_v7, %v3762_v23 }
 0x31d   :  { %2340 = vrcp.f32 %v1435_v5  ;;  %v1496_v23 = vand.u32 2147483648, %v1435_v5  ;;  %vm1490_vm15 = vweird.f32 %v1435_v5 }
 0x31e   :  { %v1533_v60 = vmul.f32 %v2335_v21, %v1532_v57  ;;  %v1570_v6 = vadd.f32 %v1562_v20, %v4172_v59 }
 0x31f   :  { %v1497_v26 = vor.u32 1.1754944e-38, %v1496_v23 }
 0x320   :  { %v1534_v4 = vadd.f32 %v2335_v21, %v1533_v60  ;;  %v2339_v46 = vpop.eup %2338 }
 0x321   :  { %v1439_v1 = vadd.f32 1.0, %v2339_v46 }
 0x322   :  { %v1538_v30 = vsel %vm1537_vm12, %v2335_v21, %v1534_v4 }
 0x323   :  { %v2341_v8 = vpop.eup %2340  ;;  %v1543_v58 = vsel %vm1540_vm13, %v1542_v48, %v1538_v30  ;;  %2160 = vmatmul.msk.f32.gmra.mxu3 %vm127_vm0, %v3799_v34  ;;  %2342 = vrcp.f32 %v1439_v1  ;;  %v1556_v9 = vand.u32 2147483648, %v1439_v1  ;;  %v1554_v28 = vand.u32 2147483647, %v1439_v1 }
 0x324   :  { %v1566_v17 = vmul.f32 %v1543_v58, %v3771_v51  ;;  %v1486_v18 = vmul.f32 %v2341_v8, %v1435_v5  ;;  %2166 = vmatmul.msk.f32.gmra.mxu1 %vm127_vm0, %v1579_v52  ;;  %vm1491_vm14 = vweird.f32 %v2341_v8  ;;  %v1494_v51 = vand.u32 2147483647, %v1435_v5 }
 0x325   :  { %vm1492_vm1 = vmor %vm1490_vm15, %vm1491_vm14  ;;  %vm1550_vm4 = vweird.f32 %v1439_v1  ;;  %v1557_v11 = vor.u32 1.1754944e-38, %v1556_v9  ;;  %vm1555_vm3 = vcmp.eq.f32.partialorder %v1554_v28, 8.507059e+37 }
 0x326   :  { %v1487_v15 = vsub.f32 1.0, %v1486_v18  ;;  %v1574_v47 = vadd.f32 %v1566_v17, %v4171_v56  ;;  %vm1495_vm10 = vcmp.eq.f32.partialorder %v1494_v51, 8.507059e+37 }
 0x328   :  { %v1488_v2 = vmul.f32 %v2341_v8, %v1487_v15  ;;  %1688 = vmatpush.msra.mxu2 %v1574_v47 }
 0x329   :  { %v2343_v37 = vpop.eup %2342 }
 0x32a   :  { %1689 = vmatpush.msra.mxu2 %v1570_v6  ;;  %v1489_v12 = vadd.f32 %v2341_v8, %v1488_v2  ;;  %v1546_v49 = vmul.f32 %v2343_v37, %v1439_v1  ;;  %vm1551_vm5 = vweird.f32 %v2343_v37 }
 0x32b   :  { %2167 = vmatmul.msk.f32.vlgmr.msra.gmra.mxu2 %vm127_vm0, %v3779_v53  ;;  %2161 = vmatmul.msk.f32.gmra.mxu3 %vm127_vm0, %v3814_v10  ;;  %vm1552_vm2 = vmor %vm1550_vm4, %vm1551_vm5 }
 0x32c   :  { %v1547_v32 = vsub.f32 1.0, %v1546_v49  ;;  %v1493_v42 = vsel %vm1492_vm1, %v2341_v8, %v1489_v12 }
 0x32d   :  { %v1498_v22 = vsel %vm1495_vm10, %v1497_v26, %v1493_v42 }
 0x32e   :  { %v1548_v45 = vmul.f32 %v2343_v37, %v1547_v32  ;;  %v1563_v41 = vmul.f32 %v1498_v22, %v3795_v16  ;;  %v3854_v16 = vpop.permute.xlu0 %1586 }
 0x330   :  { %v1549_v55 = vadd.f32 %v2343_v37, %v1548_v45  ;;  %v1571_v27 = vadd.f32 %v1563_v41, %v4174_v35 }
 0x332   :  { %v1553_v31 = vsel %vm1552_vm2, %v2343_v37, %v1549_v55 }
 0x333   :  { %2168 = vmatmul.msk.f32.gmra.mxu2 %vm127_vm0, %v3799_v34  ;;  %2162 = vmatmul.msk.f32.gmra.mxu3 %vm127_vm0, %v1579_v52  ;;  %v1558_v25 = vsel %vm1555_vm3, %v1557_v11, %v1553_v31 }
 0x334   :  { %v1567_v40 = vmul.f32 %v1558_v25, %v3807_v19 }
 0x336   :  { %v1575_v13 = vadd.f32 %v1567_v40, %v4173_v61  ;;  %v3873_v60 = vpop.permute.xlu0 %1601 }
 0x338   :  { %1717 = vmatpush.msra.mxu0 %v1575_v13 }
 0x33a   :  { %1718 = vmatpush.msra.mxu0 %v1571_v27 }
 0x33b   :  { %2169 = vmatmul.msk.f32.gmra.mxu2 %vm127_vm0, %v3814_v10  ;;  %2171 = vmatmul.msk.f32.vlgmr.msra.gmra.mxu0 %vm127_vm0, %v3779_v53 }
 0x343   :  { %2170 = vmatmul.msk.f32.gmra.mxu2 %vm127_vm0, %v1579_v52  ;;  %2172 = vmatmul.msk.f32.gmra.mxu0 %vm127_vm0, %v3799_v34 }
 0x34b   :  { %2173 = vmatmul.msk.f32.gmra.mxu0 %vm127_vm0, %v3814_v10 }
 0x353   :  { %2174 = vmatmul.msk.f32.gmra.mxu0 %vm127_vm0, %v1579_v52 }
 0x389   :  { %v1662_v29 = vpop.f32.mrf.mxu1 }
 0x38a   :  { %v1663_v24 = vadd.f32 %v1662_v29, %v3854_v16 }
 0x38c   :  { %v2176_v19 = vmul.f32 -1.442695, %v1663_v24 }
 0x38e   :  { %2344 = vpow2.f32 %v2176_v19 }
 0x391   :  { %v1665_v53 = vpop.f32.mrf.mxu1 }
 0x392   :  { %v3860_v33 = vadd.f32 %v1665_v53, %v3857_v50 }
 0x394   :  { %v2345_v21 = vpop.eup %2344  ;;  %v2180_v34 = vmul.f32 -1.442695, %v3860_v33 }
 0x395   :  { %v1781_v39 = vadd.f32 1.0, %v2345_v21 }
 0x396   :  { %2346 = vpow2.f32 %v2180_v34 }
 0x397   :  { %2348 = vrcp.f32 %v1781_v39  ;;  %v1820_v0 = vand.u32 2147483647, %v1781_v39  ;;  %v1822_v4 = vand.u32 2147483648, %v1781_v39  ;;  %vm1816_vm6 = vweird.f32 %v1781_v39 }
 0x399   :  { %v1668_v36 = vpop.f32.mrf.mxu1  ;;  %v1823_v58 = vor.u32 1.1754944e-38, %v1822_v4  ;;  %vm1821_vm8 = vcmp.eq.f32.partialorder %v1820_v0, 8.507059e+37 }
 0x39a   :  { %v3866_v38 = vadd.f32 %v1668_v36, %v3863_v14 }
 0x39c   :  { %v2347_v54 = vpop.eup %2346  ;;  %v2184_v44 = vmul.f32 -1.442695, %v3866_v38 }
 0x39d   :  { %v2349_v10 = vpop.eup %2348  ;;  %v1785_v3 = vadd.f32 1.0, %v2347_v54 }
 0x39e   :  { %v1633_v5 = vpop.f32.mrf.mxu3  ;;  %v1812_v57 = vmul.f32 %v2349_v10, %v1781_v39  ;;  %2350 = vpow2.f32 %v2184_v44  ;;  %vm1817_vm0 = vweird.f32 %v2349_v10 }
 0x39f   :  { %v3870_v62 = vadd.f32 %v1633_v5, %v3854_v16  ;;  %2352 = vrcp.f32 %v1785_v3  ;;  %vm1818_vm7 = vmor %vm1816_vm6, %vm1817_vm0  ;;  %v1882_v37 = vand.u32 2147483648, %v1785_v3  ;;  %v1880_v23 = vand.u32 2147483647, %v1785_v3 }
 0x3a0   :  { %v1813_v63 = vsub.f32 1.0, %v1812_v57  ;;  %vm1876_vm11 = vweird.f32 %v1785_v3 }
 0x3a1   :  { %v2175_v43 = vmul.f32 -1.442695, %v3870_v62  ;;  %v1671_v46 = vpop.f32.mrf.mxu1  ;;  %v1883_v45 = vor.u32 1.1754944e-38, %v1882_v37  ;;  %vm1881_vm13 = vcmp.eq.f32.partialorder %v1880_v23, 8.507059e+37 }
 0x3a2   :  { %v1814_v7 = vmul.f32 %v2349_v10, %v1813_v63  ;;  %v3876_v48 = vadd.f32 %v1671_v46, %v3873_v60 }
 0x3a3   :  { %2354 = vpow2.f32 %v2175_v43 }
 0x3a4   :  { %v2351_v30 = vpop.eup %2350  ;;  %v1815_v1 = vadd.f32 %v2349_v10, %v1814_v7  ;;  %v2188_v52 = vmul.f32 -1.442695, %v3876_v48 }
 0x3a5   :  { %v2353_v8 = vpop.eup %2352  ;;  %v1789_v20 = vadd.f32 1.0, %v2351_v30 }
 0x3a6   :  { %v1636_v17 = vpop.f32.mrf.mxu3  ;;  %v1819_v18 = vsel %vm1818_vm7, %v2349_v10, %v1815_v1  ;;  %v1872_v15 = vmul.f32 %v2353_v8, %v1785_v3  ;;  %2356 = vpow2.f32 %v2188_v52  ;;  %vm1877_vm9 = vweird.f32 %v2353_v8 }
 0x3a7   :  { %v1824_v56 = vsel %vm1821_vm8, %v1823_v58, %v1819_v18  ;;  %2358 = vrcp.f32 %v1789_v20  ;;  %v3880_v6 = vadd.f32 %v1636_v17, %v3857_v50  ;;  %vm1878_vm12 = vmor %vm1876_vm11, %vm1877_vm9  ;;  %v1940_v61 = vand.u32 2147483647, %v1789_v20 }
 0x3a8   :  { %v2037_v2 = vmul.f32 %v1824_v56, %v1663_v24  ;;  %v1873_v59 = vsub.f32 1.0, %v1872_v15  ;;  %v1942_v27 = vand.u32 2147483648, %v1789_v20  ;;  %vm1936_vm15 = vweird.f32 %v1789_v20 }
 0x3a9   :  { %v2355_v47 = vpop.eup %2354  ;;  %v2179_v51 = vmul.f32 -1.442695, %v3880_v6  ;;  %vm1941_vm1 = vcmp.eq.f32.partialorder %v1940_v61, 8.507059e+37 }
 0x3aa   :  { %v3882_v12 = vadd.f32 1.0, %v2355_v47  ;;  %2053 = vst [vmem:[#allocation8 + $0x8] sm:$0xff] %v2037_v2  ;;  %v1874_v49 = vmul.f32 %v2353_v8, %v1873_v59  ;;  %v1943_v10 = vor.u32 1.1754944e-38, %v1942_v27 }
 0x3ac   :  { %2360 = vrcp.f32 %v3882_v12  ;;  %v2357_v32 = vpop.eup %2356  ;;  %v1875_v9 = vadd.f32 %v2353_v8, %v1874_v49  ;;  %v1805_v29 = vand.u32 2147483647, %v3882_v12  ;;  %v1807_v34 = vand.u32 2147483648, %v3882_v12 }
 0x3ad   :  { %2362 = vpow2.f32 %v2179_v51  ;;  %v2359_v42 = vpop.eup %2358  ;;  %v3886_v28 = vadd.f32 1.0, %v2357_v32  ;;  %vm1801_vm10 = vweird.f32 %v3882_v12 }
 0x3ae   :  { %v1691_v26 = vpop.f32.mrf.mxu2  ;;  %v1639_v55 = vpop.f32.mrf.mxu3  ;;  %v1879_v22 = vsel %vm1878_vm12, %v2353_v8, %v1875_v9  ;;  %v1932_v11 = vmul.f32 %v2359_v42, %v1789_v20  ;;  %vm1937_vm14 = vweird.f32 %v2359_v42  ;;  %vm3904_vm4 = vcmp.eq.f32.partialorder %v1805_v29, 8.507059e+37 }
 0x3af   :  { %v3889_v31 = vadd.f32 %v1691_v26, %v3854_v16  ;;  %v1884_v25 = vsel %vm1881_vm13, %v1883_v45, %v1879_v22  ;;  %2364 = vrcp.f32 %v3886_v28  ;;  %v3896_v24 = vadd.f32 %v1639_v55, %v3863_v14  ;;  %vm1938_vm5 = vmor %vm1936_vm15, %vm1937_vm14 }
 0x3b0   :  { %v2041_v41 = vmul.f32 %v1884_v25, %v3860_v33  ;;  %v1933_v40 = vsub.f32 1.0, %v1932_v11  ;;  %v1808_v46 = vor.u32 1.1754944e-38, %v1807_v34  ;;  %v2000_v7 = vand.u32 2147483647, %v3886_v28 }
 0x3b1   :  { %v2177_v13 = vmul.f32 -1.442695, %v3889_v31  ;;  %v2183_v39 = vmul.f32 -1.442695, %v3896_v24  ;;  %v2002_v17 = vand.u32 2147483648, %v3886_v28  ;;  %vm1996_vm6 = vweird.f32 %v3886_v28 }
 0x3b2   :  { %v2361_v35 = vpop.eup %2360  ;;  %2057 = vst [vmem:[#allocation8 + $0x28] sm:$0xff] %v2041_v41  ;;  %v1934_v53 = vmul.f32 %v2359_v42, %v1933_v40  ;;  %vm2001_vm8 = vcmp.eq.f32.partialorder %v2000_v7, 8.507059e+37 }
 0x3b3   :  { %v2363_v19 = vpop.eup %2362  ;;  %v1797_v21 = vmul.f32 %v2361_v35, %v3882_v12  ;;  %2366 = vpow2.f32 %v2177_v13  ;;  %vm1802_vm2 = vweird.f32 %v2361_v35  ;;  %v2003_v32 = vor.u32 1.1754944e-38, %v2002_v17 }
 0x3b4   :  { %v3900_v33 = vadd.f32 1.0, %v2363_v19  ;;  %v1935_v36 = vadd.f32 %v2359_v42, %v1934_v53  ;;  %vm1803_vm3 = vmor %vm1801_vm10, %vm1802_vm2 }
 0x3b5   :  { %v1798_v54 = vsub.f32 1.0, %v1797_v21  ;;  %v2365_v44 = vpop.eup %2364 }
 0x3b6   :  { %2368 = vrcp.f32 %v3900_v33  ;;  %v1694_v5 = vpop.f32.mrf.mxu2  ;;  %v1939_v57 = vsel %vm1938_vm5, %v2359_v42, %v1935_v36  ;;  %v1992_v43 = vmul.f32 %v2365_v44, %v3886_v28  ;;  %v1642_v0 = vpop.f32.mrf.mxu3  ;;  %vm1997_vm0 = vweird.f32 %v2365_v44 }
 0x3b7   :  { %v1799_v63 = vmul.f32 %v2361_v35, %v1798_v54  ;;  %v1944_v4 = vsel %vm1941_vm1, %v1943_v10, %v1939_v57  ;;  %2370 = vpow2.f32 %v2183_v39  ;;  %v3913_v8 = vadd.f32 %v1694_v5, %v3857_v50  ;;  %vm1998_vm7 = vmor %vm1996_vm6, %vm1997_vm0 }
 0x3b8   :  { %v2045_v30 = vmul.f32 %v1944_v4, %v3866_v38  ;;  %v1993_v52 = vsub.f32 1.0, %v1992_v43  ;;  %v1720_v58 = vpop.f32.mrf.mxu0  ;;  %v3919_v18 = vadd.f32 %v1642_v0, %v3873_v60  ;;  %v1865_v28 = vand.u32 2147483647, %v3900_v33 }
 0x3b9   :  { %v1800_v1 = vadd.f32 %v2361_v35, %v1799_v63  ;;  %v2367_v20 = vpop.eup %2366  ;;  %v3922_v15 = vadd.f32 %v1720_v58, %v3854_v16  ;;  %v2181_v2 = vmul.f32 -1.442695, %v3913_v8  ;;  %v1867_v22 = vand.u32 2147483648, %v3900_v33 }
 0x3ba   :  { %2061 = vst [vmem:[#allocation8 + $0x48] sm:$0xff] %v2045_v30  ;;  %v1994_v56 = vmul.f32 %v2365_v44, %v1993_v52  ;;  %v3924_v47 = vadd.f32 1.0, %v2367_v20  ;;  %v2187_v12 = vmul.f32 -1.442695, %v3919_v18  ;;  %vm1861_vm11 = vweird.f32 %v3900_v33 }
 0x3bb   :  { %v1804_v38 = vsel %vm1803_vm3, %v2361_v35, %v1800_v1  ;;  %v2178_v9 = vmul.f32 -1.442695, %v3922_v15  ;;  %v1868_v27 = vor.u32 1.1754944e-38, %v1867_v22  ;;  %vm1866_vm13 = vcmp.eq.f32.partialorder %v1865_v28, 8.507059e+37 }
 0x3bc   :  { %v2369_v59 = vpop.eup %2368  ;;  %v1809_v37 = vsel %vm3904_vm4, %v1808_v46, %v1804_v38  ;;  %v1995_v23 = vadd.f32 %v2365_v44, %v1994_v56  ;;  %2372 = vrcp.f32 %v3924_v47  ;;  %v1835_v21 = vand.u32 2147483647, %v3924_v47 }
 0x3bd   :  { %v2036_v49 = vmul.f32 %v1809_v37, %v3870_v62  ;;  %v1857_v16 = vmul.f32 %v2369_v59, %v3900_v33  ;;  %v2371_v51 = vpop.eup %2370  ;;  %2374 = vpow2.f32 %v2181_v2  ;;  %vm1862_vm9 = vweird.f32 %v2369_v59 }
 0x3be   :  { %v1999_v42 = vsel %vm1998_vm7, %v2365_v44, %v1995_v23  ;;  %v3936_v26 = vadd.f32 1.0, %v2371_v51  ;;  %v1697_v62 = vpop.f32.mrf.mxu2  ;;  %2376 = vpow2.f32 %v2187_v12  ;;  %vm1863_vm12 = vmor %vm1861_vm11, %vm1862_vm9  ;;  %v1837_v10 = vand.u32 2147483648, %v3924_v47 }
 0x3bf   :  { %2052 = vst [vmem:[#allocation8] sm:$0xff] %v2036_v49  ;;  %v1858_v45 = vsub.f32 1.0, %v1857_v16  ;;  %v2004_v55 = vsel %vm2001_vm8, %v2003_v32, %v1999_v42  ;;  %v3943_v40 = vadd.f32 %v1697_v62, %v3863_v14  ;;  %vm1831_vm15 = vweird.f32 %v3924_v47 }
 0x3c0   :  { %v2049_v11 = vmul.f32 %v2004_v55, %v3876_v48  ;;  %2378 = vrcp.f32 %v3936_v26  ;;  %v1723_v41 = vpop.f32.mrf.mxu0  ;;  %v1925_v63 = vand.u32 2147483647, %v3936_v26  ;;  %v1927_v43 = vand.u32 2147483648, %v3936_v26 }
 0x3c1   :  { %v1859_v25 = vmul.f32 %v2369_v59, %v1858_v45  ;;  %2380 = vpow2.f32 %v2178_v9  ;;  %v3947_v13 = vadd.f32 %v1723_v41, %v3857_v50  ;;  %v2185_v48 = vmul.f32 -1.442695, %v3943_v40 }
 0x3c2   :  { %2065 = vst [vmem:[#allocation8 + $0x68] sm:$0xff] %v2049_v11  ;;  %v2373_v35 = vpop.eup %2372  ;;  %vm3965_vm1 = vcmp.eq.f32.partialorder %v1835_v21, 8.507059e+37  ;;  %v1838_v30 = vor.u32 1.1754944e-38, %v1837_v10  ;;  %vm1921_vm5 = vweird.f32 %v3936_v26  ;;  %vm3972_vm2 = vcmp.eq.f32.partialorder %v1925_v63, 8.507059e+37 }
 0x3c3   :  { %v1860_v61 = vadd.f32 %v2369_v59, %v1859_v25  ;;  %v2375_v29 = vpop.eup %2374  ;;  %v1827_v53 = vmul.f32 %v2373_v35, %v3924_v47  ;;  %2382 = vpow2.f32 %v2185_v48  ;;  %v2182_v50 = vmul.f32 -1.442695, %v3947_v13 }
 0x3c4   :  { %v2377_v34 = vpop.eup %2376  ;;  %v3952_v36 = vadd.f32 1.0, %v2375_v29  ;;  %vm1832_vm14 = vweird.f32 %v2373_v35  ;;  %v1928_v17 = vor.u32 1.1754944e-38, %v1927_v43 }
 0x3c5   :  { %v1864_v19 = vsel %vm1863_vm12, %v2369_v59, %v1860_v61  ;;  %v1828_v44 = vsub.f32 1.0, %v1827_v53  ;;  %v3957_v3 = vadd.f32 1.0, %v2377_v34  ;;  %vm1833_vm10 = vmor %vm1831_vm15, %vm1832_vm14 }
 0x3c6   :  { %v1869_v39 = vsel %vm1866_vm13, %v1868_v27, %v1864_v19  ;;  %v2379_v33 = vpop.eup %2378  ;;  %2384 = vrcp.f32 %v3952_v36  ;;  %v1700_v38 = vpop.f32.mrf.mxu2  ;;  %vm1891_vm3 = vweird.f32 %v3952_v36  ;;  %v1895_v47 = vand.u32 2147483647, %v3952_v36 }
 0x3c7   :  { %v2040_v54 = vmul.f32 %v1869_v39, %v3880_v6  ;;  %v2381_v5 = vpop.eup %2380  ;;  %v1917_v57 = vmul.f32 %v2379_v33, %v3936_v26  ;;  %v1829_v0 = vmul.f32 %v2373_v35, %v1828_v44  ;;  %2386 = vrcp.f32 %v3957_v3 }
 0x3c8   :  { %2388 = vpow2.f32 %v2182_v50  ;;  %v1726_v46 = vpop.f32.mrf.mxu0  ;;  %v3970_v1 = vadd.f32 1.0, %v2381_v5  ;;  %vm1922_vm4 = vweird.f32 %v2379_v33  ;;  %v1897_v12 = vand.u32 2147483648, %v3952_v36 }
 0x3c9   :  { %2056 = vst [vmem:[#allocation8 + $0x20] sm:$0xff] %v2040_v54  ;;  %v1918_v4 = vsub.f32 1.0, %v1917_v57  ;;  %v1830_v7 = vadd.f32 %v2373_v35, %v1829_v0  ;;  %v2383_v52 = vpop.eup %2382  ;;  %vm1923_vm0 = vmor %vm1921_vm5, %vm1922_vm4  ;;  %vm1981_vm6 = vweird.f32 %v3957_v3  ;;  %v3991_v32 = vadd.f32 %v1700_v38, %v3873_v60 }
 0x3ca   :  { %2390 = vrcp.f32 %v3970_v1  ;;  %v3982_v49 = vadd.f32 1.0, %v2383_v52  ;;  %v1985_v62 = vand.u32 2147483647, %v3957_v3  ;;  %v1987_v55 = vand.u32 2147483648, %v3957_v3 }
 0x3cb   :  { %v1919_v58 = vmul.f32 %v2379_v33, %v1918_v4  ;;  %v1834_v56 = vsel %vm1833_vm10, %v2373_v35, %v1830_v7  ;;  %vm3998_vm7 = vcmp.eq.f32.partialorder %v1895_v47, 8.507059e+37  ;;  %v1898_v11 = vor.u32 1.1754944e-38, %v1897_v12 }
 0x3cc   :  { %v2385_v2 = vpop.eup %2384  ;;  %v1839_v59 = vsel %vm3965_vm1, %v1838_v30, %v1834_v56  ;;  %2392 = vrcp.f32 %v3982_v49  ;;  %v2189_v27 = vmul.f32 -1.442695, %v3991_v32  ;;  %v4008_v48 = vadd.f32 %v1726_v46, %v3863_v14 }
 0x3cd   :  { %v1920_v37 = vadd.f32 %v2379_v33, %v1919_v58  ;;  %v2387_v23 = vpop.eup %2386  ;;  %v2038_v16 = vmul.f32 %v1839_v59, %v3889_v31  ;;  %v1887_v51 = vmul.f32 %v2385_v2, %v3952_v36  ;;  %vm1892_vm8 = vweird.f32 %v2385_v2 }
 0x3ce   :  { %v2389_v9 = vpop.eup %2388  ;;  %v1977_v45 = vmul.f32 %v2387_v23, %v3957_v3  ;;  %vm1982_vm9 = vweird.f32 %v2387_v23  ;;  %vm4010_vm11 = vcmp.eq.f32.partialorder %v1985_v62, 8.507059e+37  ;;  %v1988_v34 = vor.u32 1.1754944e-38, %v1987_v55  ;;  %vm1893_vm12 = vmor %vm1891_vm3, %vm1892_vm8 }
 0x3cf   :  { %v1924_v42 = vsel %vm1923_vm0, %v2379_v33, %v1920_v37  ;;  %2054 = vst [vmem:[#allocation8 + $0x10] sm:$0xff] %v2038_v16  ;;  %v1888_v26 = vsub.f32 1.0, %v1887_v51  ;;  %v4004_v35 = vadd.f32 1.0, %v2389_v9  ;;  %v1850_v39 = vand.u32 2147483647, %v3970_v1  ;;  %vm1983_vm14 = vmor %vm1981_vm6, %vm1982_vm9 }
 0x3d0   :  { %v1929_v31 = vsel %vm3972_vm2, %v1928_v17, %v1924_v42  ;;  %v1978_v25 = vsub.f32 1.0, %v1977_v45  ;;  %v2391_v41 = vpop.eup %2390  ;;  %v1729_v53 = vpop.f32.mrf.mxu0  ;;  %v1852_v33 = vand.u32 2147483648, %v3970_v1  ;;  %v2186_v10 = vmul.f32 -1.442695, %v4008_v48 }
 0x3d1   :  { %v2044_v22 = vmul.f32 %v1929_v31, %v3896_v24  ;;  %v1889_v61 = vmul.f32 %v2385_v2, %v1888_v26  ;;  %v1842_v24 = vmul.f32 %v2391_v41, %v3970_v1  ;;  %2394 = vrcp.f32 %v4004_v35 }
 0x3d2   :  { %v1979_v29 = vmul.f32 %v2387_v23, %v1978_v25  ;;  %vm1847_vm13 = vweird.f32 %v2391_v41  ;;  %v2393_v54 = vpop.eup %2392  ;;  %2396 = vpow2.f32 %v2189_v27  ;;  %v4026_v5 = vadd.f32 %v1729_v53, %v3873_v60 }
 0x3d3   :  { %2060 = vst [vmem:[#allocation8 + $0x40] sm:$0xff] %v2044_v22  ;;  %v1890_v21 = vadd.f32 %v2385_v2, %v1889_v61  ;;  %v1843_v50 = vsub.f32 1.0, %v1842_v24  ;;  %v1947_v43 = vmul.f32 %v2393_v54, %v3982_v49  ;;  %vm1846_vm15 = vweird.f32 %v3970_v1 }
 0x3d4   :  { %v1980_v14 = vadd.f32 %v2387_v23, %v1979_v29  ;;  %vm4035_vm1 = vcmp.eq.f32.partialorder %v1850_v39, 8.507059e+37  ;;  %v1853_v46 = vor.u32 1.1754944e-38, %v1852_v33  ;;  %vm1848_vm5 = vmor %vm1846_vm15, %vm1847_vm13  ;;  %v1957_v52 = vand.u32 2147483648, %v3982_v49 }
 0x3d5   :  { %v1894_v44 = vsel %vm1893_vm12, %v2385_v2, %v1890_v21  ;;  %v1844_v63 = vmul.f32 %v2391_v41, %v1843_v50  ;;  %v1948_v7 = vsub.f32 1.0, %v1947_v43  ;;  %2398 = vpow2.f32 %v2186_v10 }
 0x3d6   :  { %v1899_v36 = vsel %vm3998_vm7, %v1898_v11, %v1894_v44  ;;  %v1984_v57 = vsel %vm1983_vm14, %v2387_v23, %v1980_v14  ;;  %v2190_v1 = vmul.f32 -1.442695, %v4026_v5  ;;  %vm1952_vm10 = vweird.f32 %v2393_v54 }
 0x3d7   :  { %v2042_v0 = vmul.f32 %v1899_v36, %v3913_v8  ;;  %v1989_v6 = vsel %vm4010_vm11, %v1988_v34, %v1984_v57  ;;  %v1845_v4 = vadd.f32 %v2391_v41, %v1844_v63  ;;  %v2395_v30 = vpop.eup %2394  ;;  %v1955_v8 = vand.u32 2147483647, %v3982_v49 }
 0x3d8   :  { %v2048_v60 = vmul.f32 %v1989_v6, %v3919_v18  ;;  %v1949_v20 = vmul.f32 %v2393_v54, %v1948_v7  ;;  %v1902_v18 = vmul.f32 %v2395_v30, %v4004_v35  ;;  %v2397_v17 = vpop.eup %2396  ;;  %vm1951_vm4 = vweird.f32 %v3982_v49 }
 0x3d9   :  { %2058 = vst [vmem:[#allocation8 + $0x30] sm:$0xff] %v2042_v0  ;;  %v1849_v58 = vsel %vm1848_vm5, %v2391_v41, %v1845_v4  ;;  %2400 = vpow2.f32 %v2190_v1  ;;  %v1794_v59 = vadd.f32 1.0, %v2397_v17  ;;  %vm1953_vm2 = vmor %vm1951_vm4, %vm1952_vm10  ;;  %vm1956_vm3 = vcmp.eq.f32.partialorder %v1955_v8, 8.507059e+37 }
 0x3da   :  { %2064 = vst [vmem:[#allocation8 + $0x60] sm:$0xff] %v2048_v60  ;;  %v1854_v38 = vsel %vm4035_vm1, %v1853_v46, %v1849_v58  ;;  %v1950_v47 = vadd.f32 %v2393_v54, %v1949_v20  ;;  %v1903_v2 = vsub.f32 1.0, %v1902_v18  ;;  %v1958_v37 = vor.u32 1.1754944e-38, %v1957_v52 }
 0x3db   :  { %v2039_v56 = vmul.f32 %v1854_v38, %v3922_v15  ;;  %v1910_v12 = vand.u32 2147483647, %v4004_v35  ;;  %v1912_v23 = vand.u32 2147483648, %v4004_v35  ;;  %vm1907_vm0 = vweird.f32 %v2395_v30  ;;  %v2399_v9 = vpop.eup %2398 }
 0x3dc   :  { %v1954_v16 = vsel %vm1953_vm2, %v2393_v54, %v1950_v47  ;;  %v1904_v51 = vmul.f32 %v2395_v30, %v1903_v2  ;;  %2402 = vrcp.f32 %v1794_v59  ;;  %vm1906_vm6 = vweird.f32 %v4004_v35 }
 0x3dd   :  { %2055 = vst [vmem:[#allocation8 + $0x18] sm:$0xff] %v2039_v56  ;;  %v1959_v49 = vsel %vm1956_vm3, %v1958_v37, %v1954_v16  ;;  %v1791_v45 = vadd.f32 1.0, %v2399_v9  ;;  %vm1908_vm7 = vmor %vm1906_vm6, %vm1907_vm0  ;;  %v1913_v55 = vor.u32 1.1754944e-38, %v1912_v23  ;;  %vm1911_vm8 = vcmp.eq.f32.partialorder %v1910_v12, 8.507059e+37 }
 0x3de   :  { %v2046_v42 = vmul.f32 %v1959_v49, %v3943_v40  ;;  %v1905_v15 = vadd.f32 %v2395_v30, %v1904_v51  ;;  %v2015_v61 = vand.u32 2147483647, %v1794_v59  ;;  %v2017_v35 = vand.u32 2147483648, %v1794_v59 }
 0x3df   :  { %v2401_v62 = vpop.eup %2400  ;;  %2404 = vrcp.f32 %v1791_v45  ;;  %vm2011_vm11 = vweird.f32 %v1794_v59  ;;  %v1972_v34 = vand.u32 2147483648, %v1791_v45  ;;  %v1970_v50 = vand.u32 2147483647, %v1791_v45 }
 0x3e0   :  { %2062 = vst [vmem:[#allocation8 + $0x50] sm:$0xff] %v2046_v42  ;;  %v1909_v31 = vsel %vm1908_vm7, %v2395_v30, %v1905_v15  ;;  %v1795_v28 = vadd.f32 1.0, %v2401_v62  ;;  %vm2016_vm13 = vcmp.eq.f32.partialorder %v2015_v61, 8.507059e+37  ;;  %v2018_v21 = vor.u32 1.1754944e-38, %v2017_v35 }
 0x3e1   :  { %v1914_v26 = vsel %vm1911_vm8, %v1913_v55, %v1909_v31  ;;  %vm1966_vm15 = vweird.f32 %v1791_v45  ;;  %v1973_v57 = vor.u32 1.1754944e-38, %v1972_v34  ;;  %vm1971_vm10 = vcmp.eq.f32.partialorder %v1970_v50, 8.507059e+37 }
 0x3e2   :  { %v2403_v22 = vpop.eup %2402  ;;  %v2043_v11 = vmul.f32 %v1914_v26, %v3947_v13  ;;  %2406 = vrcp.f32 %v1795_v28  ;;  %v2032_v36 = vand.u32 2147483648, %v1795_v28  ;;  %v2030_v43 = vand.u32 2147483647, %v1795_v28 }
 0x3e3   :  { %v2007_v25 = vmul.f32 %v2403_v22, %v1794_v59  ;;  %vm2012_vm9 = vweird.f32 %v2403_v22  ;;  %vm2026_vm4 = vweird.f32 %v1795_v28 }
 0x3e4   :  { %2059 = vst [vmem:[#allocation8 + $0x38] sm:$0xff] %v2043_v11  ;;  %vm2013_vm12 = vmor %vm2011_vm11, %vm2012_vm9  ;;  %v2033_v4 = vor.u32 1.1754944e-38, %v2032_v36  ;;  %vm2031_vm3 = vcmp.eq.f32.partialorder %v2030_v43, 8.507059e+37 }
 0x3e5   :  { %v2008_v40 = vsub.f32 1.0, %v2007_v25  ;;  %v2405_v41 = vpop.eup %2404 }
 0x3e6   :  { %v1962_v29 = vmul.f32 %v2405_v41, %v1791_v45  ;;  %vm1967_vm14 = vweird.f32 %v2405_v41 }
 0x3e7   :  { %v2009_v27 = vmul.f32 %v2403_v22, %v2008_v40  ;;  %vm1968_vm1 = vmor %vm1966_vm15, %vm1967_vm14 }
 0x3e8   :  { %v2407_v19 = vpop.eup %2406  ;;  %v1963_v53 = vsub.f32 1.0, %v1962_v29 }
 0x3e9   :  { %v2010_v24 = vadd.f32 %v2403_v22, %v2009_v27  ;;  %v2022_v39 = vmul.f32 %v2407_v19, %v1795_v28  ;;  %vm2027_vm5 = vweird.f32 %v2407_v19 }
 0x3ea   :  { %v1964_v14 = vmul.f32 %v2405_v41, %v1963_v53  ;;  %vm2028_vm2 = vmor %vm2026_vm4, %vm2027_vm5 }
 0x3eb   :  { %v2014_v13 = vsel %vm2013_vm12, %v2403_v22, %v2010_v24  ;;  %v2023_v54 = vsub.f32 1.0, %v2022_v39 }
 0x3ec   :  { %v2019_v33 = vsel %vm2016_vm13, %v2018_v21, %v2014_v13  ;;  %v1965_v10 = vadd.f32 %v2405_v41, %v1964_v14 }
 0x3ed   :  { %v2050_v44 = vmul.f32 %v2019_v33, %v3991_v32  ;;  %v2024_v63 = vmul.f32 %v2407_v19, %v2023_v54 }
 0x3ee   :  { %v1969_v0 = vsel %vm1968_vm1, %v2405_v41, %v1965_v10 }
 0x3ef   :  { %2066 = vst [vmem:[#allocation8 + $0x70] sm:$0xff] %v2050_v44  ;;  %v1974_v6 = vsel %vm1971_vm10, %v1973_v57, %v1969_v0  ;;  %v2025_v3 = vadd.f32 %v2407_v19, %v2024_v63 }
 0x3f0   :  { %v2047_v60 = vmul.f32 %v1974_v6, %v4008_v48 }
 0x3f1   :  { %v2029_v32 = vsel %vm2028_vm2, %v2407_v19, %v2025_v3 }
 0x3f2   :  { %2063 = vst [vmem:[#allocation8 + $0x58] sm:$0xff] %v2047_v60  ;;  %v2034_v46 = vsel %vm2031_vm3, %v2033_v4, %v2029_v32 }
 0x3f3   :  { %v2051_v7 = vmul.f32 %v2034_v46, %v4026_v5 }
 0x3f5   :  { %2067 = vst [vmem:[#allocation8 + $0x78] sm:$0xff] %v2051_v7 }
 0x3f6   :  { %2080 = dma.vmem_to_hbm [thread:$0]  %s2073_s20, 2048, %s2075_s23, [#allocation4], %s2514_s25, %s2514_s25, %s2515_s26  }
 0x3f7   :  { %2508 = dma.done.wait [#allocation4], 2048  }
 0x3f8   :  { %2509 = vsyncadd [#allocation4], 4294965248 }
 0x3f9   :  { %2085 = vsyncpa [#allocation3], 1 }
 0x3fa   :  { %2086 = vsyncpa [#allocation6], 1 }
 0x3fb   :  { %2087 = vsyncpa [#allocation4], 1 }

</bundles_post_ra>
